<compile_context>
chip_gen: v7x
topology: tpu7x:2x2x1
jax: 0.10.0
libtpu: 0.0.40
codegen_flags: <defaults>
</compile_context>

<pallas_src>
import functools

import jax
import jax.numpy as jnp
from jax.experimental import pallas as pl
from jax.experimental.pallas import tpu as pltpu


def _weighted_sum_kernel(w_ref, tsk_ref, sel_ref, out_ref, *, n_out,
                         compute_dtype, precision):
    # w_ref:   (TB, R)      rule firing strengths for TB cases
    # tsk_ref: (TB, O*R)    TSK consequents, trailing dims collapsed
    # sel_ref: (O, O*R)     constant 0/1 segment selector (loaded once)
    # out_ref: (O, TB)      lane-dense output block (transposed in wrapper)
    w = w_ref[...].astype(compute_dtype)
    tsk = tsk_ref[...].astype(compute_dtype)

    # Replicate the rule weights across the n_out lane segments (exact lane
    # copies; a handful of lane placements per tile instead of the previous
    # per-output cross-lane reductions that saturated the XLU slot).
    w_rep = w if n_out == 1 else jnp.concatenate([w] * n_out, axis=-1)
    prod = tsk * w_rep                                    # one VPU multiply

    # Segmented rule reduction as a single MXU matmul against the constant
    # selector.  NT form (contract on the last dim of both) keeps TB on the
    # MXU's wide axis and yields the output directly as (n_out, TB).
    out_t = jax.lax.dot_general(
        sel_ref[...], prod,
        dimension_numbers=(((1,), (1,)), ((), ())),
        preferred_element_type=jnp.float32,
        precision=precision)
    out_ref[...] = out_t.astype(out_ref.dtype)


def _vmem_config():
    """Generation-aware (budget for block sizing, scoped-VMEM limit)."""
    cap = 64 * 1024 * 1024
    try:
        info = pltpu.get_tpu_info()
        cap = int(getattr(info, "vmem_capacity_bytes", cap) or cap)
    except Exception:
        pass  # conservative default works on every generation
    if cap >= 96 * 1024 * 1024:                 # v5e / v6e: 128 MiB VMEM
        return 56 * 1024 * 1024, 100 * 1024 * 1024
    return 28 * 1024 * 1024, 48 * 1024 * 1024   # v7x: 64 MiB per TensorCore


def _sanitize_block(tb, n_cases):
    if tb >= n_cases:
        return n_cases                    # single full-extent block (legal)
    # tb is the lane axis of the output block -> multiple of 128 (this also
    # covers the 16/32 sublane packing multiples for bf16/int8 case axes).
    tb = max(128, (tb // 128) * 128)
    return min(tb, n_cases)


def _choose_block_cases(n_cases, n_out, n_rules, w_dtype, tsk_dtype,
                        compute_dtype, out_dtype, vmem_budget_bytes,
                        max_block_cases=32768):
    """Pick cases-per-grid-step from a VMEM budget (inputs double-buffered,
    lane padding to 128, plus the in-kernel full-tile temporaries)."""
    lane = 128
    or_pad = pl.cdiv(n_out * n_rules, lane) * lane
    r_pad = pl.cdiv(n_rules, lane) * lane
    in_b = 2 * (or_pad * jnp.dtype(tsk_dtype).itemsize
                + r_pad * jnp.dtype(w_dtype).itemsize)      # double-buffered
    tmp_b = 3 * or_pad * jnp.dtype(compute_dtype).itemsize  # w_rep/prod/casts
    out_b = 2 * 8 * jnp.dtype(out_dtype).itemsize           # (8-pad, tb) blk
    per_case = in_b + tmp_b + out_b
    tb = int(min(vmem_budget_bytes // per_case, max_block_cases))
    return _sanitize_block(tb, n_cases)


def weighted_sum_layer(weights, tsk, *, block_cases=None,
                       min_pallas_elements=16384):
    """weights: (N, R), tsk: (N, O, R) -> (N, O)."""
    n_cases, n_rules = weights.shape
    n_cases_t, n_out, n_rules_t = tsk.shape
    assert (n_cases_t, n_rules_t) == (n_cases, n_rules)

    out_dtype = jnp.result_type(weights.dtype, tsk.dtype)

    # Tiny problems: pallas_call launch/grid overhead dwarfs the work.
    if tsk.size < min_pallas_elements:
        return jnp.einsum("bor,br->bo", tsk, weights,
                          precision=jax.lax.Precision.HIGHEST).astype(out_dtype)

    compute_dtype = jnp.bfloat16 if out_dtype == jnp.bfloat16 else jnp.float32
    precision = (jax.lax.Precision.DEFAULT if compute_dtype == jnp.bfloat16
                 else jax.lax.Precision.HIGHEST)

    # Free contiguous reshape: out*rules on the lane axis, so each grid block
    # is one dense contiguous HBM region.
    tsk_flat = tsk.reshape(n_cases, n_out * n_rules)

    # Constant 0/1 selector: sel[o, o*n_rules + r] = 1 (XLA constant-folds).
    sel = (jnp.arange(n_out)[:, None]
           == (jnp.arange(n_out * n_rules)[None, :] // n_rules)
           ).astype(compute_dtype)

    vmem_budget, vmem_limit = _vmem_config()
    if block_cases is not None:
        tb = _sanitize_block(int(block_cases), n_cases)
    else:
        tb = _choose_block_cases(n_cases, n_out, n_rules, weights.dtype,
                                 tsk.dtype, compute_dtype, out_dtype,
                                 vmem_budget)

    kernel = functools.partial(_weighted_sum_kernel, n_out=n_out,
                               compute_dtype=compute_dtype,
                               precision=precision)

    out_t = pl.pallas_call(
        kernel,
        out_shape=jax.ShapeDtypeStruct((n_out, n_cases), out_dtype),
        grid_spec=pltpu.PrefetchScalarGridSpec(
            num_scalar_prefetch=0,
            grid=(pl.cdiv(n_cases, tb),),
            in_specs=[
                pl.BlockSpec((tb, n_rules), lambda b: (b, 0)),
                pl.BlockSpec((tb, n_out * n_rules), lambda b: (b, 0)),
                # Selector: constant block index -> DMA'd once, kept resident.
                pl.BlockSpec((n_out, n_out * n_rules), lambda b: (0, 0)),
            ],
            out_specs=pl.BlockSpec((n_out, tb), lambda b: (0, b)),
        ),
        compiler_params=pltpu.CompilerParams(
            # Case axis is independent -> shard across TCs (v7x megacore).
            dimension_semantics=("parallel",),
            vmem_limit_bytes=vmem_limit,
        ),
    )(weights, tsk_flat, sel)

    # (n_out, N) -> (N, n_out): tiny wrapper transpose traded for lane-dense,
    # unmasked in-kernel stores and long writeback DMA rows.
    return out_t.T


if __name__ == "__main__":
    key = jax.random.PRNGKey(0)
    k1, k2, k3, k4 = jax.random.split(key, 4)

    # Moderate shape exercising the batched Pallas path: multiple grid steps
    # plus a partial remainder block (1037 = 2*512 + 13).
    n_cases, n_out, n_rules = 1037, 3, 16
    weights = jax.random.uniform(k1, (n_cases, n_rules), dtype=jnp.float32)
    tsk = jax.random.normal(k2, (n_cases, n_out, n_rules), dtype=jnp.float32)

    y_ref = jnp.einsum("bor,br->bo", tsk, weights,
                       precision=jax.lax.Precision.HIGHEST)

    # Explicit block size (multi-block grid with remainder).
    y_pred = weighted_sum_layer(weights, tsk, block_cases=512)
    jax.block_until_ready(y_pred)
    assert y_pred.shape == (n_cases, n_out)
    assert jnp.allclose(y_pred, y_ref, atol=1e-4, rtol=1e-4)

    # Auto (VMEM-budget-derived) block size: single full-extent block here.
    y_auto = weighted_sum_layer(weights, tsk)
    jax.block_until_ready(y_auto)
    assert jnp.allclose(y_auto, y_ref, atol=1e-4, rtol=1e-4)

    # Tiny shape (the module's typical toy size) takes the einsum fast path.
    w_small = jax.random.uniform(k3, (4, 16), dtype=jnp.float32)
    t_small = jax.random.normal(k4, (4, 3, 16), dtype=jnp.float32)
    y_small = weighted_sum_layer(w_small, t_small)
    jax.block_until_ready(y_small)
    assert jnp.allclose(
        y_small,
        jnp.einsum("bor,br->bo", t_small, w_small,
                   precision=jax.lax.Precision.HIGHEST),
        atol=1e-4, rtol=1e-4)

    print("KERNEL_OK")
</pallas_src>

<mosaic_0001>
module attributes {stable_mosaic.version = 11 : i64} {
  func.func @_weighted_sum_kernel(%arg0: i32, %arg1: memref<512x16xf32, #tpu.memory_space<vmem>>, %arg2: memref<512x48xf32, #tpu.memory_space<vmem>>, %arg3: memref<3x48xf32, #tpu.memory_space<vmem>>, %arg4: memref<3x512xf32, #tpu.memory_space<vmem>>) attributes {dimension_semantics = [#tpu.dimension_semantics<parallel>], iteration_bounds = array<i64: 3>, scalar_prefetch = 0 : i64, scratch_operands = 0 : i64, tpu.core_type = #tpu.core_type<tc>, window_params = [{transform_indices = @transform_0, window_bounds = array<i64: 512, 16>}, {transform_indices = @transform_1, window_bounds = array<i64: 512, 48>}, {pipeline_mode = #tpu.pipeline_mode<synchronous>, transform_indices = @transform_2, window_bounds = array<i64: 3, 48>}, {transform_indices = @transform_3, window_bounds = array<i64: 3, 512>}]} {
    %c0 = arith.constant 0 : index
    %c0_0 = arith.constant 0 : index
    %0 = vector.load %arg1[%c0, %c0_0] : memref<512x16xf32, #tpu.memory_space<vmem>>, vector<512x16xf32>
    %c0_1 = arith.constant 0 : index
    %c0_2 = arith.constant 0 : index
    %1 = vector.load %arg2[%c0_1, %c0_2] : memref<512x48xf32, #tpu.memory_space<vmem>>, vector<512x48xf32>
    %2 = tpu.concatenate %0, %0, %0 in 1 : vector<512x16xf32>, vector<512x16xf32>, vector<512x16xf32> -> vector<512x48xf32>
    %3 = arith.mulf %1, %2 : vector<512x48xf32>
    %c0_3 = arith.constant 0 : index
    %c0_4 = arith.constant 0 : index
    %4 = vector.load %arg3[%c0_3, %c0_4] : memref<3x48xf32, #tpu.memory_space<vmem>>, vector<3x48xf32>
    %cst = arith.constant dense<0.000000e+00> : vector<3x512xf32>
    %5 = tpu.matmul %4, %3, %cst {dimension_numbers = #tpu.dot_dimension_numbers<[1], [1], [0], [0], [0, 0, 1, 0], [], []>, precision = #tpu.contract_precision<fp32>} : vector<3x48xf32>, vector<512x48xf32>, vector<3x512xf32> -> vector<3x512xf32>
    %c0_5 = arith.constant 0 : index
    %c0_6 = arith.constant 0 : index
    %6 = vector.load %arg4[%c0_5, %c0_6] : memref<3x512xf32, #tpu.memory_space<vmem>>, vector<3x512xf32>
    tpu.vector_store %arg4[%c0_5, %c0_6], %5 {strides = array<i32>} : memref<3x512xf32, #tpu.memory_space<vmem>>, vector<3x512xf32>,
    return
  }
  func.func @transform_0(%arg0: i32) -> (i32, i32) {
    %c0_i32 = arith.constant 0 : i32
    %c0_i32_0 = arith.constant 0 : i32
    return %arg0, %c0_i32 : i32, i32
  }
  func.func @transform_1(%arg0: i32) -> (i32, i32) {
    %c0_i32 = arith.constant 0 : i32
    %c0_i32_0 = arith.constant 0 : i32
    return %arg0, %c0_i32 : i32, i32
  }
  func.func @transform_2(%arg0: i32) -> (i32, i32) {
    %c0_i32 = arith.constant 0 : i32
    %c0_i32_0 = arith.constant 0 : i32
    %c0_i32_1 = arith.constant 0 : i32
    return %c0_i32, %c0_i32_0 : i32, i32
  }
  func.func @transform_3(%arg0: i32) -> (i32, i32) {
    %c0_i32 = arith.constant 0 : i32
    %c0_i32_0 = arith.constant 0 : i32
    return %c0_i32, %arg0 : i32, i32
  }
}

</mosaic_0001>

<bundles_post_ra>
// kernel: tpu_custom_call.1
= control target key start
LH: loop header
LB: loop body
LE: loop exit
PB: predicated region body
PF: predicated region fallthrough
CT: control target
= control target key end

     0   :  { %8 = vsyncpa [#allocation3], 0  ;;  %s5717_s0 = inlined_call_operand.vmem [shape: f32[1037,16], index: 0, kind: input, shape index: {}]   ;;  %s5718_s1 = inlined_call_operand.vmem [shape: f32[1037,48], index: 1, kind: input, shape index: {}]   ;;  %s5719_s2 = inlined_call_operand.vmem [shape: f32[3,48], index: 2, kind: input, shape index: {}]   ;;  %s5720_s3 = inlined_call_operand.hbm [shape: f32[3,1037], index: 3, kind: output, shape index: {}]  }
   0x1   :  { %10 = vsyncpa [#allocation3 + $0x1], 0  ;;  %s3997_s12 = smov 0   ;;  %s3999_s13 = smov 0  }
   0x2   :  { %s4001_s14 = smov 0   ;;  %s4003_s15 = smov 0  }
   0x3 LB: > { %s4018_s16 = sadd.s32 4294967295, %s3972_s15   ;;  %s3017_s17 = sadd.s32 4294967294, %s3972_s15   ;;  %s3972_s15 = sphi %s4003_s15, %s6100_s15   ;;  %s3968_s14 = sphi %s4001_s14, %s6099_s14   ;;  %s3964_s13 = sphi %s3999_s13, %s6098_s13   ;;  %s3960_s12 = sphi %s3997_s12, %s6097_s12  }
   0x4   : > { %s4022_s18 = sadd.s32 1, %s3972_s15   ;;  %s96_s19 = sadd.s32 1, %s3968_s14 }
   0x5   : > { %s93_s20 = ssub.s32 %s3972_s15, %s4022_s18  ;;  %p106_p0 = scmp.ne.s32.totalorder %s3968_s14, %s3964_s13 }
   0x6   : > { %p94_p1 = scmp.eq.s32.totalorder %s93_s20, 0  ;;  %p107_p2 = scmp.eq.s32.totalorder %s4018_s16, 2 }
   0x7   : > { %p112_p3 = scmp.ne.s32.totalorder %s3964_s13, %s3960_s12  ;;  %p113_p4 = scmp.eq.s32.totalorder %s3017_s17, 2 }
   0x8   : > { %s4033_s21 = scalar_select %p94_p1, %s3968_s14, %s96_s19  }
   0x9   : > { %p4035_p5 = por %p107_p2, %p106_p0  ;;  %p4039_p6 = por %p113_p4, %p112_p3 }
   0xa   : > { %p3020_p7 = scmp.ge.s32.totalorder %s3972_s15, 1  ;;  %p168_p8 = scmp.lt.s32.totalorder %s3972_s15, 4 }
   0xc   : > { %p169_p9 = pnand %p3020_p7, %p168_p8 }
   0xe   : > { %172 = sbr.rel (%p169_p9) target bundleno = 974 (0x3ce), region = 32 }
  0x15   : > { %s3022_s24 = sshll.u32 %s4018_s16, 6  ;;  %s3974_s29 = smov 16   ;;  %vm814_vm0 = vcmask 130048   ;;  %vm879_vm1 = vcmask 261120   ;;  %vm1009_vm2 = vcmask 392192  }
  0x16   : > { %p210_p10 = scmp.lt.s32.totalorder %s3022_s24, 129  ;;  %s3975_s30 = smov 32  }
  0x17   : > { %s202_s9 = sand.u32 1, %s3964_s13   ;;  %s3027_s19 = sshll.u32 (%p4035_p5), %s4018_s16, 2 }
  0x18   : > { %s6102_s24 = smov (!%p210_p10, %s3022_s24), 129  ;;  %s3021_s10 = sshll.u32 %s202_s9, 4 }
  0x19   : > { %s3023_s25 = sshll.u32 %s6102_s24, 3  ;;  %s204_s11 = scalar_lea.vmem [#allocation2], %s3021_s10 }
  0x1a   : > { %s4054_s28 = scalar_lea.vmem %s5717_s0, %s3023_s25  ;;  %s4291_s6 = scalar_lea.vmem %s5718_s1, %s3023_s25 }
  0x1b   : > { %v4057_v0 = vld [vmem:[%s4054_s28 + $0x180] sm:$0xff]  ;;  %v4067_v2 = vld [vmem:[%s4054_s28 + $0x188] sm:$0xff]  ;;  %v4113_v8 = vld [vmem:[%s4054_s28 + $0x98] sm:$0xff]  ;;  %s5663_s17 = scalar_lea.sflag [#allocation3], %s202_s9  ;;  %s2934_s20 = ssub.s32 (%p4035_p5), 9, %s3027_s19 }
  0x1c   : > { %v4060_v1 = vld [vmem:[%s4054_s28 + $0x80] sm:$0xff]  ;;  %526 = vrot.lane.b32.xlu1 %v4057_v0, %s3974_s29  ;;  %v4070_v3 = vld [vmem:[%s4054_s28 + $0x88] sm:$0xff]  ;;  %v4116_v9 = vld [vmem:[%s4054_s28 + $0x90] sm:$0xff]  ;;  %p2935_p11 = scmp.lt.s32.totalorder (%p4035_p5), %s2934_s20, 4 }
  0x1d   : > { %462 = vrot.lane.b32.xlu0 %v4060_v1, %s3974_s29  ;;  %v4077_v4 = vld [vmem:[%s4054_s28 + $0x8] sm:$0xff]  ;;  %v4080_v5 = vld [vmem:[%s4054_s28] sm:$0xff]  ;;  %v4123_v10 = vld [vmem:[%s4054_s28 + $0x198] sm:$0xff] }
  0x1e   : > { %v4087_v6 = vld [vmem:[%s4054_s28 + $0x108] sm:$0xff]  ;;  %v4090_v7 = vld [vmem:[%s4054_s28 + $0x100] sm:$0xff]  ;;  %v4126_v11 = vld [vmem:[%s4054_s28 + $0x190] sm:$0xff] }
  0x1f   : > { %v4133_v12 = vld [vmem:[%s4054_s28 + $0x18] sm:$0xff]  ;;  %v4136_v13 = vld [vmem:[%s4054_s28 + $0x10] sm:$0xff]  ;;  %v4169_v16 = vld [vmem:[%s4054_s28 + $0xa8] sm:$0xff] }
  0x20   : > { %528 = vrot.lane.b32.xlu1 %v4067_v2, %s3974_s29  ;;  %v4143_v14 = vld [vmem:[%s4054_s28 + $0x118] sm:$0xff]  ;;  %v4146_v15 = vld [vmem:[%s4054_s28 + $0x110] sm:$0xff]  ;;  %v4172_v17 = vld [vmem:[%s4054_s28 + $0xa0] sm:$0xff] }
  0x21   : > { %464 = vrot.lane.b32.xlu0 %v4070_v3, %s3974_s29  ;;  %v4179_v18 = vld [vmem:[%s4054_s28 + $0x1a8] sm:$0xff]  ;;  %v4182_v19 = vld [vmem:[%s4054_s28 + $0x1a0] sm:$0xff]  ;;  %v4225_v24 = vld [vmem:[%s4054_s28 + $0xb8] sm:$0xff] }
  0x22   : > { %v4189_v20 = vld [vmem:[%s4054_s28 + $0x28] sm:$0xff]  ;;  %v4192_v21 = vld [vmem:[%s4054_s28 + $0x20] sm:$0xff]  ;;  %v4228_v25 = vld [vmem:[%s4054_s28 + $0xb0] sm:$0xff] }
  0x23   : > { %v4199_v22 = vld [vmem:[%s4054_s28 + $0x128] sm:$0xff]  ;;  %v4202_v23 = vld [vmem:[%s4054_s28 + $0x120] sm:$0xff]  ;;  %v4235_v26 = vld [vmem:[%s4054_s28 + $0x1b8] sm:$0xff] }
  0x24   : > { %432 = vrot.lane.b32.xlu1 %v4077_v4, %s3974_s29  ;;  %v4238_v27 = vld [vmem:[%s4054_s28 + $0x1b0] sm:$0xff]  ;;  %v4245_v28 = vld [vmem:[%s4054_s28 + $0x38] sm:$0xff]  ;;  %v4281_v38 = vld [vmem:[%s4054_s28 + $0xc8] sm:$0xff] }
  0x25   : > { %430 = vrot.lane.b32.xlu0 %v4080_v5, %s3974_s29  ;;  %v4248_v29 = vld [vmem:[%s4054_s28 + $0x30] sm:$0xff]  ;;  %v4255_v30 = vld [vmem:[%s4054_s28 + $0x138] sm:$0xff]  ;;  %v4284_v39 = vld [vmem:[%s4054_s28 + $0xc0] sm:$0xff] }
  0x26   : > { %v4258_v31 = vld [vmem:[%s4054_s28 + $0x130] sm:$0xff]  ;;  %v319_v42 = vld [vmem:[%s4291_s6 + $0x88] sm:$0xff]  ;;  %v318_v43 = vld [vmem:[%s4291_s6 + $0x80] sm:$0xff] }
  0x27   : > { %v4300_v44 = vld [vmem:[%s4054_s28 + $0x1c8] sm:$0xff]  ;;  %v4303_v45 = vld [vmem:[%s4054_s28 + $0x1c0] sm:$0xff] }
  0x28   : > { %496 = vrot.lane.b32.xlu1 %v4087_v6, %s3974_s29  ;;  %v351_v54 = vld [vmem:[%s4291_s6 + $0x188] sm:$0xff]  ;;  %v350_v55 = vld [vmem:[%s4291_s6 + $0x180] sm:$0xff] }
  0x29   : > { %494 = vrot.lane.b32.xlu0 %v4090_v7, %s3974_s29  ;;  %v4318_v56 = vld [vmem:[%s4054_s28 + $0x48] sm:$0xff]  ;;  %v4321_v57 = vld [vmem:[%s4054_s28 + $0x40] sm:$0xff] }
  0x2c   : > { %656 = vrot.lane.b32.xlu1 %v4070_v3, %s3975_s30 }
  0x2d   : > { %654 = vrot.lane.b32.xlu0 %v4060_v1, %s3975_s30 }
  0x30   : > { %720 = vrot.lane.b32.xlu1 %v4067_v2, %s3975_s30 }
  0x31   : > { %718 = vrot.lane.b32.xlu0 %v4057_v0, %s3975_s30 }
  0x34   : > { %624 = vrot.lane.b32.xlu1 %v4077_v4, %s3975_s30 }
  0x35   : > { %622 = vrot.lane.b32.xlu0 %v4080_v5, %s3975_s30 }
  0x38   : > { %688 = vrot.lane.b32.xlu1 %v4087_v6, %s3975_s30 }
  0x39   : > { %686 = vrot.lane.b32.xlu0 %v4090_v7, %s3975_s30 }
  0x3c   : > { %468 = vrot.lane.b32.xlu1 %v4113_v8, %s3974_s29 }
  0x3d   : > { %466 = vrot.lane.b32.xlu0 %v4116_v9, %s3974_s29 }
  0x40   : > { %532 = vrot.lane.b32.xlu1 %v4123_v10, %s3974_s29 }
  0x41   : > { %530 = vrot.lane.b32.xlu0 %v4126_v11, %s3974_s29 }
  0x44   : > { %436 = vrot.lane.b32.xlu1 %v4133_v12, %s3974_s29 }
  0x45   : > { %434 = vrot.lane.b32.xlu0 %v4136_v13, %s3974_s29 }
  0x48   : > { %500 = vrot.lane.b32.xlu1 %v4143_v14, %s3974_s29 }
  0x49   : > { %498 = vrot.lane.b32.xlu0 %v4146_v15, %s3974_s29 }
  0x4c   : > { %660 = vrot.lane.b32.xlu1 %v4113_v8, %s3975_s30 }
  0x4d   : > { %658 = vrot.lane.b32.xlu0 %v4116_v9, %s3975_s30 }
  0x50   : > { %724 = vrot.lane.b32.xlu1 %v4123_v10, %s3975_s30 }
  0x51   : > { %722 = vrot.lane.b32.xlu0 %v4126_v11, %s3975_s30 }
  0x54   : > { %628 = vrot.lane.b32.xlu1 %v4133_v12, %s3975_s30 }
  0x55   : > { %626 = vrot.lane.b32.xlu0 %v4136_v13, %s3975_s30 }
  0x58   : > { %692 = vrot.lane.b32.xlu1 %v4143_v14, %s3975_s30 }
  0x59   : > { %690 = vrot.lane.b32.xlu0 %v4146_v15, %s3975_s30 }
  0x5c   : > { %472 = vrot.lane.b32.xlu1 %v4169_v16, %s3974_s29 }
  0x5d   : > { %470 = vrot.lane.b32.xlu0 %v4172_v17, %s3974_s29 }
  0x60   : > { %536 = vrot.lane.b32.xlu1 %v4179_v18, %s3974_s29 }
  0x61   : > { %534 = vrot.lane.b32.xlu0 %v4182_v19, %s3974_s29 }
  0x64   : > { %440 = vrot.lane.b32.xlu1 %v4189_v20, %s3974_s29 }
  0x65   : > { %438 = vrot.lane.b32.xlu0 %v4192_v21, %s3974_s29 }
  0x68   : > { %504 = vrot.lane.b32.xlu1 %v4199_v22, %s3974_s29 }
  0x69   : > { %502 = vrot.lane.b32.xlu0 %v4202_v23, %s3974_s29 }
  0x6c   : > { %664 = vrot.lane.b32.xlu1 %v4169_v16, %s3975_s30 }
  0x6d   : > { %662 = vrot.lane.b32.xlu0 %v4172_v17, %s3975_s30 }
  0x70   : > { %728 = vrot.lane.b32.xlu1 %v4179_v18, %s3975_s30 }
  0x71   : > { %726 = vrot.lane.b32.xlu0 %v4182_v19, %s3975_s30 }
  0x74   : > { %632 = vrot.lane.b32.xlu1 %v4189_v20, %s3975_s30 }
  0x75   : > { %630 = vrot.lane.b32.xlu0 %v4192_v21, %s3975_s30 }
  0x78   : > { %696 = vrot.lane.b32.xlu1 %v4199_v22, %s3975_s30 }
  0x79   : > { %694 = vrot.lane.b32.xlu0 %v4202_v23, %s3975_s30 }
  0x7c   : > { %476 = vrot.lane.b32.xlu1 %v4225_v24, %s3974_s29 }
  0x7d   : > { %474 = vrot.lane.b32.xlu0 %v4228_v25, %s3974_s29 }
  0x80   : > { %540 = vrot.lane.b32.xlu1 %v4235_v26, %s3974_s29 }
  0x81   : > { %538 = vrot.lane.b32.xlu0 %v4238_v27, %s3974_s29 }
  0x84   : > { %444 = vrot.lane.b32.xlu1 %v4245_v28, %s3974_s29 }
  0x85   : > { %442 = vrot.lane.b32.xlu0 %v4248_v29, %s3974_s29 }
  0x88   : > { %508 = vrot.lane.b32.xlu1 %v4255_v30, %s3974_s29 }
  0x89   : > { %506 = vrot.lane.b32.xlu0 %v4258_v31, %s3974_s29 }
  0x8c   : > { %668 = vrot.lane.b32.xlu1 %v4225_v24, %s3975_s30 }
  0x8d   : > { %666 = vrot.lane.b32.xlu0 %v4228_v25, %s3975_s30 }
  0x8e   : > { %v527_v32 = vpop.permute.xlu1 %526 }
  0x8f   : > { %v463_v33 = vpop.permute.xlu0 %462  ;;  %v863_v58 = vsel %vm814_vm0, %v4057_v0, %v527_v32 }
  0x90   : > { %732 = vrot.lane.b32.xlu1 %v4235_v26, %s3975_s30  ;;  %v831_v46 = vsel %vm814_vm0, %v4060_v1, %v463_v33 }
  0x91   : > { %730 = vrot.lane.b32.xlu0 %v4238_v27, %s3975_s30 }
  0x92   : > { %v529_v34 = vpop.permute.xlu1 %528 }
  0x93   : > { %v465_v35 = vpop.permute.xlu0 %464  ;;  %v864_v59 = vsel %vm814_vm0, %v4067_v2, %v529_v34  ;;  %v303_v34 = vld [vmem:[%s4291_s6 + $0x8] sm:$0xff] }
  0x94   : > { %636 = vrot.lane.b32.xlu1 %v4245_v28, %s3975_s30  ;;  %v832_v47 = vsel %vm814_vm0, %v4070_v3, %v465_v35 }
  0x95   : > { %634 = vrot.lane.b32.xlu0 %v4248_v29, %s3975_s30 }
  0x96   : > { %v433_v36 = vpop.permute.xlu1 %432 }
  0x97   : > { %v431_v37 = vpop.permute.xlu0 %430  ;;  %v816_v0 = vsel %vm814_vm0, %v4077_v4, %v433_v36  ;;  %v4348_v4 = vld [vmem:[%s4054_s28 + $0x148] sm:$0xff]  ;;  %v4351_v36 = vld [vmem:[%s4054_s28 + $0x140] sm:$0xff] }
  0x98   : > { %700 = vrot.lane.b32.xlu1 %v4255_v30, %s3975_s30 }
  0x99   : > { %698 = vrot.lane.b32.xlu0 %v4258_v31, %s3975_s30 }
  0x9a   : > { %v497_v40 = vpop.permute.xlu1 %496 }
  0x9b   : > { %v495_v41 = vpop.permute.xlu0 %494 }
  0x9c   : > { %480 = vrot.lane.b32.xlu1 %v4281_v38, %s3974_s29 }
  0x9d   : > { %478 = vrot.lane.b32.xlu0 %v4284_v39, %s3974_s29 }
  0x9e   : > { %v657_v48 = vpop.permute.xlu1 %656 }
  0x9f   : > { %v655_v49 = vpop.permute.xlu0 %654  ;;  %v897_v50 = vsel %vm879_vm1, %v832_v47, %v657_v48  ;;  %v302_v47 = vld [vmem:[%s4291_s6] sm:$0xff] }
  0xa0   : > { %v896_v51 = vsel %vm879_vm1, %v831_v46, %v655_v49  ;;  %v961_v52 = vmul.f32 %v897_v50, %v319_v42  ;;  %544 = vrot.lane.b32.xlu1 %v4300_v44, %s3974_s29  ;;  %v815_v42 = vsel %vm814_vm0, %v4080_v5, %v431_v37  ;;  %v848_v49 = vsel %vm814_vm0, %v4087_v6, %v497_v40 }
  0xa1   : > { %v960_v53 = vmul.f32 %v896_v51, %v318_v43  ;;  %542 = vrot.lane.b32.xlu0 %v4303_v45, %s3974_s29  ;;  %v847_v50 = vsel %vm814_vm0, %v4090_v7, %v495_v41 }
  0xa2   : > { %v1065_v60 = vsel %vm1009_vm2, %v961_v52, 0  ;;  %v721_v62 = vpop.permute.xlu1 %720 }
  0xa3   : > { %v1062_v61 = vsel %vm1009_vm2, %v960_v53, 0  ;;  %v719_v63 = vpop.permute.xlu0 %718  ;;  %v1257_v1 = vand.u32 4294901760, %v1065_v60  ;;  %v929_v33 = vsel %vm879_vm1, %v864_v59, %v721_v62  ;;  %v334_v62 = vld [vmem:[%s4291_s6 + $0x100] sm:$0xff] }
  0xa4   : > { %v1254_v3 = vand.u32 4294901760, %v1062_v61  ;;  %v928_v35 = vsel %vm879_vm1, %v863_v58, %v719_v63  ;;  %v993_v32 = vmul.f32 %v929_v33, %v351_v54  ;;  %448 = vrot.lane.b32.xlu1 %v4318_v56, %s3974_s29 }
  0xa5   : > { %v992_v2 = vmul.f32 %v928_v35, %v350_v55  ;;  %446 = vrot.lane.b32.xlu0 %v4321_v57, %s3974_s29  ;;  %v4340_v43 = vsub.f32 %v1065_v60, %v1257_v1 }
  0xa6   : > { %v4342_v46 = vsub.f32 %v1062_v61, %v1254_v3  ;;  %v4345_v48 = vpack.c.bf16 %v1257_v1, %v1254_v3  ;;  %v1161_v51 = vsel %vm1009_vm2, %v993_v32, 0  ;;  %v625_v37 = vpop.permute.xlu1 %624  ;;  %v335_v61 = vld [vmem:[%s4291_s6 + $0x108] sm:$0xff] }
  0xa7   : > { %5843 = vst [vmem:[#allocation5_spill] sm:$0xff] %v4340_v43  ;;  %v1158_v5 = vsel %vm1009_vm2, %v992_v2, 0  ;;  %v623_v52 = vpop.permute.xlu0 %622  ;;  %v2112_v53 = vand.u32 4294901760, %v1161_v51  ;;  %v881_v55 = vsel %vm879_vm1, %v816_v0, %v625_v37  ;;  %v1435_v41 = vand.u32 4294901760, %v4340_v43 }
  0xa8   : > { %5844 = vst [vmem:[#allocation6_spill] sm:$0xff] %v4342_v46  ;;  %5845 = vst [vmem:[#allocation7_spill] sm:$0xff] %v4345_v48  ;;  %v2109_v54 = vand.u32 4294901760, %v1158_v5  ;;  %v880_v58 = vsel %vm879_vm1, %v815_v42, %v623_v52  ;;  %3445 = vmatprep.subr.bf16.mxu0 %v4345_v48  ;;  %v945_v6 = vmul.f32 %v881_v55, %v303_v34  ;;  %512 = vrot.lane.b32.xlu1 %v4348_v4, %s3974_s29 }
  0xa9   : > { %v944_v40 = vmul.f32 %v880_v58, %v302_v47  ;;  %510 = vrot.lane.b32.xlu0 %v4351_v36, %s3974_s29  ;;  %v1428_v7 = vand.u32 4294901760, %v4342_v46  ;;  %v4368_v59 = vsub.f32 %v1161_v51, %v2112_v53  ;;  %v1436_v2 = vsub.f32 %v4340_v43, %v1435_v41 }
  0xaa   : > { %v4370_v60 = vsub.f32 %v1158_v5, %v2109_v54  ;;  %v4374_v63 = vpack.c.bf16 %v2112_v53, %v2109_v54  ;;  %v1017_v3 = vsel %vm1009_vm2, %v945_v6, 0  ;;  %v689_v35 = vpop.permute.xlu1 %688 }
  0xab   : > { %5846 = vst [vmem:[#allocation8_spill] sm:$0xff] %v4368_v59  ;;  %v1014_v33 = vsel %vm1009_vm2, %v944_v40, 0  ;;  %v687_v0 = vpop.permute.xlu0 %686  ;;  %v1429_v32 = vsub.f32 %v4342_v46, %v1428_v7  ;;  %v1209_v34 = vand.u32 4294901760, %v1017_v3  ;;  %v913_v47 = vsel %vm879_vm1, %v848_v49, %v689_v35 }
  0xac   : > { %5847 = vst [vmem:[#allocation9_spill] sm:$0xff] %v4370_v60  ;;  %5848 = vst [vmem:[#allocation10_spill] sm:$0xff] %v4374_v63  ;;  %v1206_v42 = vand.u32 4294901760, %v1014_v33  ;;  %v912_v51 = vsel %vm879_vm1, %v847_v50, %v687_v0  ;;  %3637 = vmatprep.subr.bf16.mxu1 %v4374_v63  ;;  %v977_v5 = vmul.f32 %v913_v47, %v335_v61  ;;  %672 = vrot.lane.b32.xlu1 %v4281_v38, %s3975_s30 }
  0xad   : > { %v976_v37 = vmul.f32 %v912_v51, %v334_v62  ;;  %670 = vrot.lane.b32.xlu0 %v4284_v39, %s3975_s30  ;;  %v1430_v52 = vand.u32 4294901760, %v1429_v32  ;;  %v1437_v53 = vand.u32 4294901760, %v1436_v2  ;;  %v4393_v54 = vsub.f32 %v1017_v3, %v1209_v34 }
  0xae   : > { %v4395_v55 = vsub.f32 %v1014_v33, %v1206_v42  ;;  %v4397_v58 = vpack.c.bf16 %v1209_v34, %v1206_v42  ;;  %v2283_v49 = vand.u32 4294901760, %v4370_v60  ;;  %v1113_v50 = vsel %vm1009_vm2, %v977_v5, 0  ;;  %v469_v40 = vpop.permute.xlu1 %468 }
  0xaf   : > { %5849 = vst [vmem:[#allocation11_spill] sm:$0xff] %v4393_v54  ;;  %v1110_v6 = vsel %vm1009_vm2, %v976_v37, 0  ;;  %v467_v61 = vpop.permute.xlu0 %466  ;;  %v4402_v38 = vpack.c.bf16 %v1437_v53, %v1430_v52  ;;  %v2290_v39 = vand.u32 4294901760, %v4368_v59  ;;  %v1323_v62 = vand.u32 4294901760, %v4393_v54 }
  0xb0   : > { %5850 = vst [vmem:[#allocation12_spill] sm:$0xff] %v4395_v55  ;;  %5851 = vst [vmem:[#allocation13_spill] sm:$0xff] %v4397_v58  ;;  %v1316_v3 = vand.u32 4294901760, %v4395_v55  ;;  %v2064_v33 = vand.u32 4294901760, %v1113_v50  ;;  %v2061_v35 = vand.u32 4294901760, %v1110_v6  ;;  %3447 = vmatpush3.bf16.xpose.msra.mxu0 %v4397_v58  ;;  %736 = vrot.lane.b32.xlu1 %v4300_v44, %s3975_s30  ;;  %v2284_v0 = vsub.f32 %v4370_v60, %v2283_v49 }
  0xb1   : > { %734 = vrot.lane.b32.xlu0 %v4303_v45, %s3975_s30  ;;  %v2291_v42 = vsub.f32 %v4368_v59, %v2290_v39  ;;  %v1324_v44 = vsub.f32 %v4393_v54, %v1323_v62  ;;  %v3902_v54 = vld [vmem:[%s4054_s28 + $0x158] sm:$0xff] }
  0xb2   : > { %v4413_v32 = vsub.f32 %v1113_v50, %v2064_v33  ;;  %v4415_v2 = vsub.f32 %v1110_v6, %v2061_v35  ;;  %v4417_v34 = vpack.c.bf16 %v2064_v33, %v2061_v35  ;;  %v533_v47 = vpop.permute.xlu1 %532  ;;  %v2285_v5 = vand.u32 4294901760, %v2284_v0 }
  0xb3   : > { %v531_v51 = vpop.permute.xlu0 %530  ;;  %v1317_v37 = vsub.f32 %v4395_v55, %v1316_v3  ;;  %v2292_v50 = vand.u32 4294901760, %v2291_v42  ;;  %v1325_v33 = vand.u32 4294901760, %v1324_v44  ;;  %v4447_v35 = vpack.c.bf16 %v2290_v39, %v2283_v49 }
  0xb4   : > { %5852 = vst [vmem:[#allocation14_spill] sm:$0xff] %v4413_v32  ;;  %5853 = vst [vmem:[#allocation15_spill] sm:$0xff] %v4415_v2  ;;  %v2178_v52 = vand.u32 4294901760, %v4413_v32  ;;  %v2171_v53 = vand.u32 4294901760, %v4415_v2  ;;  %3639 = vmatpush3.bf16.xpose.msra.mxu1 %v4417_v34  ;;  %640 = vrot.lane.b32.xlu1 %v4318_v56, %s3975_s30  ;;  %v4441_v56 = vpack.c.bf16 %v1435_v41, %v1428_v7  ;;  %v4458_v41 = vld [vmem:[%s4054_s28 + $0xd8] sm:$0xff] }
  0xb5   : > { %5854 = vst [vmem:[#allocation16_spill] sm:$0xff] %v4417_v34  ;;  %638 = vrot.lane.b32.xlu0 %v4321_v57, %s3975_s30  ;;  %v1318_v6 = vand.u32 4294901760, %v1317_v37  ;;  %v4443_v37 = vpack.c.bf16 %v2292_v50, %v2285_v5  ;;  %5856 = vst [vmem:[#allocation18_spill] sm:$0xff] %v4447_v35  ;;  %v4449_v34 = vpack.c.bf16 %v1323_v62, %v1316_v3  ;;  %v4461_v5 = vld [vmem:[%s4054_s28 + $0xd0] sm:$0xff]  ;;  %v4472_v3 = vld [vmem:[%s4054_s28 + $0x1d8] sm:$0xff] }
  0xb6   : > { %v2172_v0 = vsub.f32 %v4415_v2, %v2171_v53  ;;  %v2179_v45 = vsub.f32 %v4413_v32, %v2178_v52  ;;  %5855 = vst [vmem:[#allocation17_spill] sm:$0xff] %v4441_v56  ;;  %v437_v57 = vpop.permute.xlu1 %436  ;;  %v4455_v7 = vpack.c.bf16 %v2178_v52, %v2171_v53 }
  0xb7   : > { %v435_v42 = vpop.permute.xlu0 %434  ;;  %v4445_v44 = vpack.c.bf16 %v1325_v33, %v1318_v6  ;;  %5857 = vst [vmem:[#allocation19_spill] sm:$0xff] %v4449_v34  ;;  %v352_v34 = vld [vmem:[%s4291_s6 + $0x190] sm:$0xff] }
  0xb8   : > { %v2173_v1 = vand.u32 4294901760, %v2172_v0  ;;  %v2180_v58 = vand.u32 4294901760, %v2179_v45  ;;  %704 = vrot.lane.b32.xlu1 %v4348_v4, %s3975_s30  ;;  %5858 = vst [vmem:[#allocation20_spill] sm:$0xff] %v4455_v7  ;;  %v321_v4 = vld [vmem:[%s4291_s6 + $0x98] sm:$0xff]  ;;  %v4475_v45 = vld [vmem:[%s4054_s28 + $0x1d0] sm:$0xff] }
  0xb9   : > { %702 = vrot.lane.b32.xlu0 %v4351_v36, %s3975_s30  ;;  %v320_v36 = vld [vmem:[%s4291_s6 + $0x90] sm:$0xff]  ;;  %v353_v7 = vld [vmem:[%s4291_s6 + $0x198] sm:$0xff] }
  0xba   : > { %v4463_v49 = vpack.c.bf16 %v2180_v58, %v2173_v1  ;;  %v501_v39 = vpop.permute.xlu1 %500  ;;  %v834_v1 = vsel %vm814_vm0, %v4113_v8, %v469_v40  ;;  %v833_v58 = vsel %vm814_vm0, %v4116_v9, %v467_v61  ;;  %v4490_v8 = vld [vmem:[%s4054_s28 + $0x58] sm:$0xff]  ;;  %v4493_v40 = vld [vmem:[%s4054_s28 + $0x50] sm:$0xff]  ;;  %v866_v9 = vsel %vm814_vm0, %v4123_v10, %v533_v47 }
  0xbb   : > { %v499_v62 = vpop.permute.xlu0 %498  ;;  %v865_v61 = vsel %vm814_vm0, %v4126_v11, %v531_v51  ;;  %v818_v10 = vsel %vm814_vm0, %v4133_v12, %v437_v57  ;;  %v305_v51 = vld [vmem:[%s4291_s6 + $0x18] sm:$0xff]  ;;  %v850_v57 = vsel %vm814_vm0, %v4143_v14, %v501_v39 }
  0xbc   : > { %484 = vrot.lane.b32.xlu1 %v4458_v41, %s3974_s29  ;;  %v4520_v12 = vld [vmem:[%s4054_s28 + $0x158] sm:$0xff] }
  0xbd   : > { %482 = vrot.lane.b32.xlu0 %v4461_v5, %s3974_s29 }
  0xbe   : > { %v661_v52 = vpop.permute.xlu1 %660 }
  0xbf   : > { %v659_v53 = vpop.permute.xlu0 %658  ;;  %v899_v50 = vsel %vm879_vm1, %v834_v1, %v661_v52 }
  0xc0   : > { %v898_v6 = vsel %vm879_vm1, %v833_v58, %v659_v53  ;;  %v963_v33 = vmul.f32 %v899_v50, %v321_v4  ;;  %548 = vrot.lane.b32.xlu1 %v4472_v3, %s3974_s29 }
  0xc1   : > { %v962_v0 = vmul.f32 %v898_v6, %v320_v36  ;;  %546 = vrot.lane.b32.xlu0 %v4475_v45, %s3974_s29 }
  0xc2   : > { %v1071_v4 = vsel %vm1009_vm2, %v963_v33, 0  ;;  %v725_v1 = vpop.permute.xlu1 %724  ;;  %v817_v33 = vsel %vm814_vm0, %v4136_v13, %v435_v42 }
  0xc3   : > { %v1068_v36 = vsel %vm1009_vm2, %v962_v0, 0  ;;  %v723_v58 = vpop.permute.xlu0 %722  ;;  %v1263_v52 = vand.u32 4294901760, %v1071_v4  ;;  %v931_v50 = vsel %vm879_vm1, %v866_v9, %v725_v1 }
  0xc4   : > { %v1260_v53 = vand.u32 4294901760, %v1068_v36  ;;  %v930_v6 = vsel %vm879_vm1, %v865_v61, %v723_v58  ;;  %v995_v47 = vmul.f32 %v931_v50, %v353_v7  ;;  %452 = vrot.lane.b32.xlu1 %v4490_v8, %s3974_s29  ;;  %v304_v61 = vld [vmem:[%s4291_s6 + $0x10] sm:$0xff]  ;;  %v849_v7 = vsel %vm814_vm0, %v4146_v15, %v499_v62 }
  0xc5   : > { %v994_v11 = vmul.f32 %v930_v6, %v352_v34  ;;  %450 = vrot.lane.b32.xlu0 %v4493_v40, %s3974_s29  ;;  %v4512_v0 = vsub.f32 %v1071_v4, %v1263_v52  ;;  %v4523_v34 = vld [vmem:[%s4054_s28 + $0x150] sm:$0xff] }
  0xc6   : > { %v4514_v9 = vsub.f32 %v1068_v36, %v1260_v53  ;;  %v4517_v1 = vpack.c.bf16 %v1263_v52, %v1260_v53  ;;  %v1167_v58 = vsel %vm1009_vm2, %v995_v47, 0  ;;  %v629_v42 = vpop.permute.xlu1 %628 }
  0xc7   : > { %5859 = vst [vmem:[#allocation21_spill] sm:$0xff] %v4512_v0  ;;  %v1164_v13 = vsel %vm1009_vm2, %v994_v11, 0  ;;  %v627_v4 = vpop.permute.xlu0 %626  ;;  %v2118_v36 = vand.u32 4294901760, %v1167_v58  ;;  %v883_v53 = vsel %vm879_vm1, %v818_v10, %v629_v42  ;;  %v5726_v62 = vand.u32 4294901760, %v4512_v0  ;;  %v337_v10 = vld [vmem:[%s4291_s6 + $0x118] sm:$0xff]  ;;  %v336_v11 = vld [vmem:[%s4291_s6 + $0x110] sm:$0xff] }
  0xc8   : > { %5860 = vst [vmem:[#allocation22_spill] sm:$0xff] %v4514_v9  ;;  %5861 = vst [vmem:[#allocation23_spill] sm:$0xff] %v4517_v1  ;;  %v2115_v52 = vand.u32 4294901760, %v1164_v13  ;;  %v882_v50 = vsel %vm879_vm1, %v817_v33, %v627_v4  ;;  %3449 = vmatprep.subr.bf16.mxu0 %v4517_v1  ;;  %v947_v14 = vmul.f32 %v883_v53, %v305_v51  ;;  %516 = vrot.lane.b32.xlu1 %v4520_v12, %s3974_s29 }
  0xc9   : > { %v946_v39 = vmul.f32 %v882_v50, %v304_v61  ;;  %514 = vrot.lane.b32.xlu0 %v4523_v34, %s3974_s29  ;;  %v5725_v15 = vand.u32 4294901760, %v4514_v9  ;;  %v4540_v6 = vsub.f32 %v1167_v58, %v2118_v36  ;;  %v5872_v63 = vand.u32 4294901760, %v4512_v0 }
  0xca   : > { %v4542_v47 = vsub.f32 %v1164_v13, %v2115_v52  ;;  %v4546_v33 = vpack.c.bf16 %v2118_v36, %v2115_v52  ;;  %v1023_v61 = vsel %vm1009_vm2, %v947_v14, 0  ;;  %v693_v4 = vpop.permute.xlu1 %692  ;;  %v1450_v13 = vsub.f32 %v4512_v0, %v5726_v62 }
  0xcb   : > { %5862 = vst [vmem:[#allocation24_spill] sm:$0xff] %v4540_v6  ;;  %v1020_v42 = vsel %vm1009_vm2, %v946_v39, 0  ;;  %v691_v53 = vpop.permute.xlu0 %690  ;;  %v1443_v58 = vsub.f32 %v4514_v9, %v5725_v15  ;;  %v1215_v50 = vand.u32 4294901760, %v1023_v61  ;;  %v915_v52 = vsel %vm879_vm1, %v850_v57, %v693_v4 }
  0xcc   : > { %5863 = vst [vmem:[#allocation25_spill] sm:$0xff] %v4542_v47  ;;  %5864 = vst [vmem:[#allocation26_spill] sm:$0xff] %v4546_v33  ;;  %v1212_v36 = vand.u32 4294901760, %v1020_v42  ;;  %v914_v51 = vsel %vm879_vm1, %v849_v7, %v691_v53  ;;  %3641 = vmatprep.subr.bf16.mxu1 %v4546_v33  ;;  %v979_v14 = vmul.f32 %v915_v52, %v337_v10  ;;  %676 = vrot.lane.b32.xlu1 %v4458_v41, %s3975_s30 }
  0xcd   : > { %v978_v39 = vmul.f32 %v914_v51, %v336_v11  ;;  %674 = vrot.lane.b32.xlu0 %v4461_v5, %s3975_s30  ;;  %v1444_v15 = vand.u32 4294901760, %v1443_v58  ;;  %v1451_v35 = vand.u32 4294901760, %v1450_v13  ;;  %v4565_v56 = vsub.f32 %v1023_v61, %v1215_v50 }
  0xce   : > { %v4567_v62 = vsub.f32 %v1020_v42, %v1212_v36  ;;  %v4569_v1 = vpack.c.bf16 %v1215_v50, %v1212_v36  ;;  %v2297_v57 = vand.u32 4294901760, %v4542_v47  ;;  %v1119_v7 = vsel %vm1009_vm2, %v979_v14, 0  ;;  %v473_v11 = vpop.permute.xlu1 %472 }
  0xcf   : > { %5865 = vst [vmem:[#allocation27_spill] sm:$0xff] %v4565_v56  ;;  %v1116_v10 = vsel %vm1009_vm2, %v978_v39, 0  ;;  %v471_v51 = vpop.permute.xlu0 %470  ;;  %v4574_v41 = vpack.c.bf16 %v1451_v35, %v1444_v15  ;;  %v2304_v5 = vand.u32 4294901760, %v4540_v6  ;;  %v1337_v4 = vand.u32 4294901760, %v4565_v56 }
  0xd0   : > { %5866 = vst [vmem:[#allocation28_spill] sm:$0xff] %v4567_v62  ;;  %5867 = vst [vmem:[#allocation29_spill] sm:$0xff] %v4569_v1  ;;  %v1330_v61 = vand.u32 4294901760, %v4567_v62  ;;  %v2070_v42 = vand.u32 4294901760, %v1119_v7  ;;  %v2067_v53 = vand.u32 4294901760, %v1116_v10  ;;  %3451 = vmatpush3.bf16.xpose.msra.mxu0 %v4569_v1  ;;  %740 = vrot.lane.b32.xlu1 %v4472_v3, %s3975_s30  ;;  %v2298_v58 = vsub.f32 %v4542_v47, %v2297_v57 }
  0xd1   : > { %738 = vrot.lane.b32.xlu0 %v4475_v45, %s3975_s30  ;;  %v2305_v50 = vsub.f32 %v4540_v6, %v2304_v5  ;;  %v1338_v3 = vsub.f32 %v4565_v56, %v1337_v4  ;;  %v4619_v48 = vpack.c.bf16 %v2304_v5, %v2297_v57 }
  0xd2   : > { %v4585_v35 = vsub.f32 %v1119_v7, %v2070_v42  ;;  %v4587_v15 = vsub.f32 %v1116_v10, %v2067_v53  ;;  %v4589_v13 = vpack.c.bf16 %v2070_v42, %v2067_v53  ;;  %v537_v36 = vpop.permute.xlu1 %536  ;;  %v2299_v14 = vand.u32 4294901760, %v2298_v58 }
  0xd3   : > { %v535_v52 = vpop.permute.xlu0 %534  ;;  %v1331_v39 = vsub.f32 %v4567_v62, %v1330_v61  ;;  %v2306_v10 = vand.u32 4294901760, %v2305_v50  ;;  %v1339_v53 = vand.u32 4294901760, %v1338_v3  ;;  %5874 = vst [vmem:[#allocation34_spill] sm:$0xff] %v4619_v48  ;;  %v4621_v62 = vpack.c.bf16 %v1337_v4, %v1330_v61 }
  0xd4   : > { %5868 = vst [vmem:[#allocation30_spill] sm:$0xff] %v4585_v35  ;;  %5869 = vst [vmem:[#allocation31_spill] sm:$0xff] %v4587_v15  ;;  %v2192_v1 = vand.u32 4294901760, %v4585_v35  ;;  %v2185_v7 = vand.u32 4294901760, %v4587_v15  ;;  %3643 = vmatpush3.bf16.xpose.msra.mxu1 %v4589_v13  ;;  %644 = vrot.lane.b32.xlu1 %v4490_v8, %s3975_s30  ;;  %v5871_v8 = vand.u32 4294901760, %v4514_v9  ;;  %v836_v61 = vsel %vm814_vm0, %v4169_v16, %v473_v11  ;;  %v4662_v16 = vld [vmem:[%s4054_s28 + $0x68] sm:$0xff] }
  0xd5   : > { %5870 = vst [vmem:[#allocation32_spill] sm:$0xff] %v4589_v13  ;;  %642 = vrot.lane.b32.xlu0 %v4493_v40, %s3975_s30  ;;  %v1332_v42 = vand.u32 4294901760, %v1331_v39  ;;  %v4615_v3 = vpack.c.bf16 %v2306_v10, %v2299_v14  ;;  %5875 = vst [vmem:[#allocation35_spill] sm:$0xff] %v4621_v62  ;;  %v4630_v14 = vld [vmem:[%s4054_s28 + $0xe8] sm:$0xff]  ;;  %v4633_v10 = vld [vmem:[%s4054_s28 + $0xe0] sm:$0xff] }
  0xd6   : > { %v2186_v45 = vsub.f32 %v4587_v15, %v2185_v7  ;;  %v2193_v33 = vsub.f32 %v4585_v35, %v2192_v1  ;;  %v4613_v40 = vpack.c.bf16 %v5872_v63, %v5871_v8  ;;  %v441_v50 = vpop.permute.xlu1 %440  ;;  %v4627_v63 = vpack.c.bf16 %v2192_v1, %v2185_v7  ;;  %v322_v1 = vld [vmem:[%s4291_s6 + $0xa0] sm:$0xff] }
  0xd7   : > { %v439_v39 = vpop.permute.xlu0 %438  ;;  %v4617_v58 = vpack.c.bf16 %v1339_v53, %v1332_v42  ;;  %v354_v62 = vld [vmem:[%s4291_s6 + $0x1a0] sm:$0xff] }
  0xd8   : > { %5873 = vst [vmem:[#allocation33_spill] sm:$0xff] %v4613_v40  ;;  %v2187_v13 = vand.u32 4294901760, %v2186_v45  ;;  %v2194_v15 = vand.u32 4294901760, %v2193_v33  ;;  %708 = vrot.lane.b32.xlu1 %v4520_v12, %s3975_s30  ;;  %5876 = vst [vmem:[#allocation36_spill] sm:$0xff] %v4627_v63  ;;  %v323_v12 = vld [vmem:[%s4291_s6 + $0xa8] sm:$0xff]  ;;  %v4647_v33 = vld [vmem:[%s4054_s28 + $0x1e0] sm:$0xff] }
  0xd9   : > { %706 = vrot.lane.b32.xlu0 %v4523_v34, %s3975_s30  ;;  %v4644_v34 = vld [vmem:[%s4054_s28 + $0x1e8] sm:$0xff]  ;;  %v4665_v11 = vld [vmem:[%s4054_s28 + $0x60] sm:$0xff] }
  0xda   : > { %v4635_v57 = vpack.c.bf16 %v2194_v15, %v2187_v13  ;;  %v505_v5 = vpop.permute.xlu1 %504  ;;  %v835_v15 = vsel %vm814_vm0, %v4172_v17, %v471_v51  ;;  %v355_v63 = vld [vmem:[%s4291_s6 + $0x1a8] sm:$0xff]  ;;  %v868_v17 = vsel %vm814_vm0, %v4179_v18, %v537_v36  ;;  %v867_v51 = vsel %vm814_vm0, %v4182_v19, %v535_v52 }
  0xdb   : > { %v503_v4 = vpop.permute.xlu0 %502  ;;  %v820_v18 = vsel %vm814_vm0, %v4189_v20, %v441_v50  ;;  %v307_v52 = vld [vmem:[%s4291_s6 + $0x28] sm:$0xff]  ;;  %v852_v50 = vsel %vm814_vm0, %v4199_v22, %v505_v5 }
  0xdc   : > { %488 = vrot.lane.b32.xlu1 %v4630_v14, %s3974_s29  ;;  %v4692_v20 = vld [vmem:[%s4054_s28 + $0x168] sm:$0xff] }
  0xdd   : > { %486 = vrot.lane.b32.xlu0 %v4633_v10, %s3974_s29 }
  0xde   : > { %v665_v13 = vpop.permute.xlu1 %664 }
  0xdf   : > { %v663_v45 = vpop.permute.xlu0 %662  ;;  %v901_v7 = vsel %vm879_vm1, %v836_v61, %v665_v13 }
  0xe0   : > { %v900_v42 = vsel %vm879_vm1, %v835_v15, %v663_v45  ;;  %v965_v53 = vmul.f32 %v901_v7, %v323_v12  ;;  %552 = vrot.lane.b32.xlu1 %v4644_v34, %s3974_s29 }
  0xe1   : > { %v964_v8 = vmul.f32 %v900_v42, %v322_v1  ;;  %550 = vrot.lane.b32.xlu0 %v4647_v33, %s3974_s29 }
  0xe2   : > { %v1077_v12 = vsel %vm1009_vm2, %v965_v53, 0  ;;  %v729_v61 = vpop.permute.xlu1 %728  ;;  %v819_v53 = vsel %vm814_vm0, %v4192_v21, %v439_v39 }
  0xe3   : > { %v1074_v1 = vsel %vm1009_vm2, %v964_v8, 0  ;;  %v727_v15 = vpop.permute.xlu0 %726  ;;  %v1269_v13 = vand.u32 4294901760, %v1077_v12  ;;  %v933_v7 = vsel %vm879_vm1, %v868_v17, %v729_v61 }
  0xe4   : > { %v1266_v45 = vand.u32 4294901760, %v1074_v1  ;;  %v932_v42 = vsel %vm879_vm1, %v867_v51, %v727_v15  ;;  %v997_v36 = vmul.f32 %v933_v7, %v355_v63  ;;  %456 = vrot.lane.b32.xlu1 %v4662_v16, %s3974_s29  ;;  %v306_v51 = vld [vmem:[%s4291_s6 + $0x20] sm:$0xff]  ;;  %v851_v63 = vsel %vm814_vm0, %v4202_v23, %v503_v4 }
  0xe5   : > { %v996_v19 = vmul.f32 %v932_v42, %v354_v62  ;;  %454 = vrot.lane.b32.xlu0 %v4665_v11, %s3974_s29  ;;  %v4684_v8 = vsub.f32 %v1077_v12, %v1269_v13  ;;  %v4695_v62 = vld [vmem:[%s4054_s28 + $0x160] sm:$0xff] }
  0xe6   : > { %v4686_v17 = vsub.f32 %v1074_v1, %v1266_v45  ;;  %v4689_v61 = vpack.c.bf16 %v1269_v13, %v1266_v45  ;;  %v1173_v15 = vsel %vm1009_vm2, %v997_v36, 0  ;;  %v633_v39 = vpop.permute.xlu1 %632 }
  0xe7   : > { %5877 = vst [vmem:[#allocation37_spill] sm:$0xff] %v4684_v8  ;;  %v1170_v21 = vsel %vm1009_vm2, %v996_v19, 0  ;;  %v631_v12 = vpop.permute.xlu0 %630  ;;  %v2124_v1 = vand.u32 4294901760, %v1173_v15  ;;  %v885_v45 = vsel %vm879_vm1, %v820_v18, %v633_v39  ;;  %v5742_v4 = vand.u32 4294901760, %v4684_v8  ;;  %v339_v18 = vld [vmem:[%s4291_s6 + $0x128] sm:$0xff]  ;;  %v338_v19 = vld [vmem:[%s4291_s6 + $0x120] sm:$0xff] }
  0xe8   : > { %5878 = vst [vmem:[#allocation38_spill] sm:$0xff] %v4686_v17  ;;  %5879 = vst [vmem:[#allocation39_spill] sm:$0xff] %v4689_v61  ;;  %v2121_v13 = vand.u32 4294901760, %v1170_v21  ;;  %v884_v7 = vsel %vm879_vm1, %v819_v53, %v631_v12  ;;  %3453 = vmatprep.subr.bf16.mxu0 %v4689_v61  ;;  %v949_v22 = vmul.f32 %v885_v45, %v307_v52  ;;  %520 = vrot.lane.b32.xlu1 %v4692_v20, %s3974_s29 }
  0xe9   : > { %v948_v5 = vmul.f32 %v884_v7, %v306_v51  ;;  %518 = vrot.lane.b32.xlu0 %v4695_v62, %s3974_s29  ;;  %v5741_v23 = vand.u32 4294901760, %v4686_v17  ;;  %v4712_v42 = vsub.f32 %v1173_v15, %v2124_v1 }
  0xea   : > { %v4714_v36 = vsub.f32 %v1170_v21, %v2121_v13  ;;  %v4718_v53 = vpack.c.bf16 %v2124_v1, %v2121_v13  ;;  %v1029_v51 = vsel %vm1009_vm2, %v949_v22, 0  ;;  %v697_v12 = vpop.permute.xlu1 %696  ;;  %v1464_v21 = vsub.f32 %v4684_v8, %v5742_v4 }
  0xeb   : > { %5880 = vst [vmem:[#allocation40_spill] sm:$0xff] %v4712_v42  ;;  %v1026_v39 = vsel %vm1009_vm2, %v948_v5, 0  ;;  %v695_v45 = vpop.permute.xlu0 %694  ;;  %v1457_v15 = vsub.f32 %v4686_v17, %v5741_v23  ;;  %v1221_v7 = vand.u32 4294901760, %v1029_v51  ;;  %v917_v13 = vsel %vm879_vm1, %v852_v50, %v697_v12 }
  0xec   : > { %5881 = vst [vmem:[#allocation41_spill] sm:$0xff] %v4714_v36  ;;  %5882 = vst [vmem:[#allocation42_spill] sm:$0xff] %v4718_v53  ;;  %v1218_v1 = vand.u32 4294901760, %v1026_v39  ;;  %v916_v52 = vsel %vm879_vm1, %v851_v63, %v695_v45  ;;  %3645 = vmatprep.subr.bf16.mxu1 %v4718_v53  ;;  %v981_v22 = vmul.f32 %v917_v13, %v339_v18  ;;  %680 = vrot.lane.b32.xlu1 %v4630_v14, %s3975_s30 }
  0xed   : > { %v980_v5 = vmul.f32 %v916_v52, %v338_v19  ;;  %678 = vrot.lane.b32.xlu0 %v4633_v10, %s3975_s30  ;;  %v1458_v23 = vand.u32 4294901760, %v1457_v15  ;;  %v1465_v48 = vand.u32 4294901760, %v1464_v21  ;;  %v4737_v40 = vsub.f32 %v1029_v51, %v1221_v7 }
  0xee   : > { %v4739_v4 = vsub.f32 %v1026_v39, %v1218_v1  ;;  %v4741_v61 = vpack.c.bf16 %v1221_v7, %v1218_v1  ;;  %v2311_v50 = vand.u32 4294901760, %v4714_v36  ;;  %v1125_v63 = vsel %vm1009_vm2, %v981_v22, 0  ;;  %v477_v19 = vpop.permute.xlu1 %476 }
  0xef   : > { %5883 = vst [vmem:[#allocation43_spill] sm:$0xff] %v4737_v40  ;;  %v1122_v18 = vsel %vm1009_vm2, %v980_v5, 0  ;;  %v475_v52 = vpop.permute.xlu0 %474  ;;  %v4746_v14 = vpack.c.bf16 %v1465_v48, %v1458_v23  ;;  %v2318_v10 = vand.u32 4294901760, %v4712_v42  ;;  %v1351_v12 = vand.u32 4294901760, %v4737_v40 }
  0xf0   : > { %5884 = vst [vmem:[#allocation44_spill] sm:$0xff] %v4739_v4  ;;  %5885 = vst [vmem:[#allocation45_spill] sm:$0xff] %v4741_v61  ;;  %v1344_v51 = vand.u32 4294901760, %v4739_v4  ;;  %v2076_v39 = vand.u32 4294901760, %v1125_v63  ;;  %v2073_v45 = vand.u32 4294901760, %v1122_v18  ;;  %3455 = vmatpush3.bf16.xpose.msra.mxu0 %v4741_v61  ;;  %744 = vrot.lane.b32.xlu1 %v4644_v34, %s3975_s30  ;;  %v2312_v15 = vsub.f32 %v4714_v36, %v2311_v50 }
  0xf1   : > { %742 = vrot.lane.b32.xlu0 %v4647_v33, %s3975_s30  ;;  %v2319_v7 = vsub.f32 %v4712_v42, %v2318_v10  ;;  %v1352_v34 = vsub.f32 %v4737_v40, %v1351_v12  ;;  %v5890_v36 = vand.u32 4294901760, %v4684_v8 }
  0xf2   : > { %v4757_v48 = vsub.f32 %v1125_v63, %v2076_v39  ;;  %v4759_v23 = vsub.f32 %v1122_v18, %v2073_v45  ;;  %v4761_v21 = vpack.c.bf16 %v2076_v39, %v2073_v45  ;;  %v541_v1 = vpop.permute.xlu1 %540  ;;  %v2313_v22 = vand.u32 4294901760, %v2312_v15 }
  0xf3   : > { %v539_v13 = vpop.permute.xlu0 %538  ;;  %v1345_v5 = vsub.f32 %v4739_v4, %v1344_v51  ;;  %v2320_v18 = vand.u32 4294901760, %v2319_v7  ;;  %v1353_v45 = vand.u32 4294901760, %v1352_v34  ;;  %v4791_v4 = vpack.c.bf16 %v2318_v10, %v2311_v50 }
  0xf4   : > { %5886 = vst [vmem:[#allocation46_spill] sm:$0xff] %v4757_v48  ;;  %5887 = vst [vmem:[#allocation47_spill] sm:$0xff] %v4759_v23  ;;  %v2206_v61 = vand.u32 4294901760, %v4757_v48  ;;  %v2199_v63 = vand.u32 4294901760, %v4759_v23  ;;  %3647 = vmatpush3.bf16.xpose.msra.mxu1 %v4761_v21  ;;  %648 = vrot.lane.b32.xlu1 %v4662_v16, %s3975_s30  ;;  %v5889_v16 = vand.u32 4294901760, %v4686_v17  ;;  %v4793_v40 = vpack.c.bf16 %v1351_v12, %v1344_v51  ;;  %v4816_v51 = vld [vmem:[%s4054_s28 + $0x1f8] sm:$0xff] }
  0xf5   : > { %5888 = vst [vmem:[#allocation48_spill] sm:$0xff] %v4761_v21  ;;  %646 = vrot.lane.b32.xlu0 %v4665_v11, %s3975_s30  ;;  %v1346_v39 = vand.u32 4294901760, %v1345_v5  ;;  %v4787_v34 = vpack.c.bf16 %v2320_v18, %v2313_v22  ;;  %5892 = vst [vmem:[#allocation50_spill] sm:$0xff] %v4791_v4  ;;  %v4802_v22 = vld [vmem:[%s4054_s28 + $0xf8] sm:$0xff]  ;;  %v4805_v18 = vld [vmem:[%s4054_s28 + $0xf0] sm:$0xff] }
  0xf6   : > { %v2200_v33 = vsub.f32 %v4759_v23, %v2199_v63  ;;  %v2207_v53 = vsub.f32 %v4757_v48, %v2206_v61  ;;  %v4785_v11 = vpack.c.bf16 %v5890_v36, %v5889_v16  ;;  %v445_v7 = vpop.permute.xlu1 %444  ;;  %5893 = vst [vmem:[#allocation51_spill] sm:$0xff] %v4793_v40  ;;  %v4799_v36 = vpack.c.bf16 %v2206_v61, %v2199_v63  ;;  %v324_v61 = vld [vmem:[%s4291_s6 + $0xb0] sm:$0xff]  ;;  %v357_v4 = vld [vmem:[%s4291_s6 + $0x1b8] sm:$0xff] }
  0xf7   : > { %v443_v5 = vpop.permute.xlu0 %442  ;;  %v4789_v15 = vpack.c.bf16 %v1353_v45, %v1346_v39 }
  0xf8   : > { %5891 = vst [vmem:[#allocation49_spill] sm:$0xff] %v4785_v11  ;;  %v2201_v21 = vand.u32 4294901760, %v2200_v33  ;;  %v2208_v23 = vand.u32 4294901760, %v2207_v53  ;;  %712 = vrot.lane.b32.xlu1 %v4692_v20, %s3975_s30  ;;  %5894 = vst [vmem:[#allocation52_spill] sm:$0xff] %v4799_v36  ;;  %v325_v53 = vld [vmem:[%s4291_s6 + $0xb8] sm:$0xff]  ;;  %v4819_v33 = vld [vmem:[%s4054_s28 + $0x1f0] sm:$0xff] }
  0xf9   : > { %710 = vrot.lane.b32.xlu0 %v4695_v62, %s3975_s30  ;;  %v356_v11 = vld [vmem:[%s4291_s6 + $0x1b0] sm:$0xff] }
  0xfa   : > { %v4807_v50 = vpack.c.bf16 %v2208_v23, %v2201_v21  ;;  %v509_v10 = vpop.permute.xlu1 %508  ;;  %v838_v23 = vsel %vm814_vm0, %v4225_v24, %v477_v19  ;;  %v837_v21 = vsel %vm814_vm0, %v4228_v25, %v475_v52  ;;  %v4834_v24 = vld [vmem:[%s4054_s28 + $0x78] sm:$0xff]  ;;  %v4837_v19 = vld [vmem:[%s4054_s28 + $0x70] sm:$0xff]  ;;  %v870_v25 = vsel %vm814_vm0, %v4235_v26, %v541_v1 }
  0xfb   : > { %v507_v12 = vpop.permute.xlu0 %506  ;;  %v869_v52 = vsel %vm814_vm0, %v4238_v27, %v539_v13  ;;  %v822_v26 = vsel %vm814_vm0, %v4245_v28, %v445_v7  ;;  %v821_v13 = vsel %vm814_vm0, %v4248_v29, %v443_v5  ;;  %v4864_v28 = vld [vmem:[%s4054_s28 + $0x178] sm:$0xff] }
  0xfc   : > { %492 = vrot.lane.b32.xlu1 %v4802_v22, %s3974_s29  ;;  %v853_v7 = vsel %vm814_vm0, %v4258_v31, %v507_v12 }
  0xfd   : > { %490 = vrot.lane.b32.xlu0 %v4805_v18, %s3974_s29 }
  0xfe   : > { %v669_v63 = vpop.permute.xlu1 %668 }
  0xff   : > { %v667_v39 = vpop.permute.xlu0 %666  ;;  %v903_v45 = vsel %vm879_vm1, %v838_v23, %v669_v63 }
 0x100   : > { %v902_v16 = vsel %vm879_vm1, %v837_v21, %v667_v39  ;;  %v967_v36 = vmul.f32 %v903_v45, %v325_v53  ;;  %556 = vrot.lane.b32.xlu1 %v4816_v51, %s3974_s29 }
 0x101   : > { %v966_v40 = vmul.f32 %v902_v16, %v324_v61  ;;  %554 = vrot.lane.b32.xlu0 %v4819_v33, %s3974_s29 }
 0x102   : > { %v1083_v53 = vsel %vm1009_vm2, %v967_v36, 0  ;;  %v733_v23 = vpop.permute.xlu1 %732 }
 0x103   : > { %v1080_v61 = vsel %vm1009_vm2, %v966_v40, 0  ;;  %v731_v21 = vpop.permute.xlu0 %730  ;;  %v1275_v63 = vand.u32 4294901760, %v1083_v53  ;;  %v935_v45 = vsel %vm879_vm1, %v870_v25, %v733_v23  ;;  %v309_v40 = vld [vmem:[%s4291_s6 + $0x38] sm:$0xff] }
 0x104   : > { %v1272_v39 = vand.u32 4294901760, %v1080_v61  ;;  %v934_v16 = vsel %vm879_vm1, %v869_v52, %v731_v21  ;;  %v999_v1 = vmul.f32 %v935_v45, %v357_v4  ;;  %460 = vrot.lane.b32.xlu1 %v4834_v24, %s3974_s29  ;;  %v308_v52 = vld [vmem:[%s4291_s6 + $0x30] sm:$0xff] }
 0x105   : > { %v998_v27 = vmul.f32 %v934_v16, %v356_v11  ;;  %458 = vrot.lane.b32.xlu0 %v4837_v19, %s3974_s29  ;;  %v4856_v36 = vsub.f32 %v1083_v53, %v1275_v63  ;;  %v4867_v4 = vld [vmem:[%s4054_s28 + $0x170] sm:$0xff]  ;;  %v854_v11 = vsel %vm814_vm0, %v4255_v30, %v509_v10 }
 0x106   : > { %v4858_v25 = vsub.f32 %v1080_v61, %v1272_v39  ;;  %v4861_v23 = vpack.c.bf16 %v1275_v63, %v1272_v39  ;;  %v1179_v21 = vsel %vm1009_vm2, %v999_v1, 0  ;;  %v637_v5 = vpop.permute.xlu1 %636 }
 0x107   : > { %5895 = vst [vmem:[#allocation53_spill] sm:$0xff] %v4856_v36  ;;  %v1176_v29 = vsel %vm1009_vm2, %v998_v27, 0  ;;  %v635_v53 = vpop.permute.xlu0 %634  ;;  %v2130_v61 = vand.u32 4294901760, %v1179_v21  ;;  %v887_v39 = vsel %vm879_vm1, %v822_v26, %v637_v5  ;;  %v5759_v12 = vand.u32 4294901760, %v4856_v36  ;;  %v341_v26 = vld [vmem:[%s4291_s6 + $0x138] sm:$0xff]  ;;  %v340_v27 = vld [vmem:[%s4291_s6 + $0x130] sm:$0xff] }
 0x108   : > { %5896 = vst [vmem:[#allocation54_spill] sm:$0xff] %v4858_v25  ;;  %5897 = vst [vmem:[#allocation55_spill] sm:$0xff] %v4861_v23  ;;  %v2127_v63 = vand.u32 4294901760, %v1176_v29  ;;  %v886_v45 = vsel %vm879_vm1, %v821_v13, %v635_v53  ;;  %3457 = vmatprep.subr.bf16.mxu0 %v4861_v23  ;;  %v951_v30 = vmul.f32 %v887_v39, %v309_v40  ;;  %524 = vrot.lane.b32.xlu1 %v4864_v28, %s3974_s29 }
 0x109   : > { %v950_v10 = vmul.f32 %v886_v45, %v308_v52  ;;  %522 = vrot.lane.b32.xlu0 %v4867_v4, %s3974_s29  ;;  %v5755_v31 = vand.u32 4294901760, %v4858_v25  ;;  %v4884_v16 = vsub.f32 %v1179_v21, %v2130_v61 }
 0x10a   : > { %v4886_v1 = vsub.f32 %v1176_v29, %v2127_v63  ;;  %v4890_v13 = vpack.c.bf16 %v2130_v61, %v2127_v63  ;;  %v1035_v52 = vsel %vm1009_vm2, %v951_v30, 0  ;;  %v701_v53 = vpop.permute.xlu1 %700  ;;  %v1478_v29 = vsub.f32 %v4856_v36, %v5759_v12 }
 0x10b   : > { %5898 = vst [vmem:[#allocation56_spill] sm:$0xff] %v4884_v16  ;;  %v1032_v5 = vsel %vm1009_vm2, %v950_v10, 0  ;;  %v699_v39 = vpop.permute.xlu0 %698  ;;  %v1471_v21 = vsub.f32 %v4858_v25, %v5755_v31  ;;  %v1227_v45 = vand.u32 4294901760, %v1035_v52  ;;  %v919_v63 = vsel %vm879_vm1, %v854_v11, %v701_v53 }
 0x10c   : > { %5899 = vst [vmem:[#allocation57_spill] sm:$0xff] %v4886_v1  ;;  %5900 = vst [vmem:[#allocation58_spill] sm:$0xff] %v4890_v13  ;;  %v1224_v61 = vand.u32 4294901760, %v1032_v5  ;;  %v918_v40 = vsel %vm879_vm1, %v853_v7, %v699_v39  ;;  %3649 = vmatprep.subr.bf16.mxu1 %v4890_v13  ;;  %v983_v30 = vmul.f32 %v919_v63, %v341_v26  ;;  %684 = vrot.lane.b32.xlu1 %v4802_v22, %s3975_s30 }
 0x10d   : > { %v982_v10 = vmul.f32 %v918_v40, %v340_v27  ;;  %682 = vrot.lane.b32.xlu0 %v4805_v18, %s3975_s30  ;;  %v1472_v31 = vand.u32 4294901760, %v1471_v21  ;;  %v1479_v23 = vand.u32 4294901760, %v1478_v29  ;;  %v4909_v48 = vsub.f32 %v1035_v52, %v1227_v45 }
 0x10e   : > { %v4911_v12 = vsub.f32 %v1032_v5, %v1224_v61  ;;  %v4913_v42 = vpack.c.bf16 %v1227_v45, %v1224_v61  ;;  %v2325_v11 = vand.u32 4294901760, %v4886_v1  ;;  %v1131_v7 = vsel %vm1009_vm2, %v983_v30, 0  ;;  %v481_v27 = vpop.permute.xlu1 %480  ;;  %v1008_v45 = vld [vmem:[%s5719_s2] sm:$0x7] }
 0x10f   : > { %5901 = vst [vmem:[#allocation59_spill] sm:$0xff] %v4909_v48  ;;  %v1128_v26 = vsel %vm1009_vm2, %v982_v10, 0  ;;  %v4918_v40 = vpop.permute.xlu0 %478  ;;  %v4920_v53 = vpack.c.bf16 %v1479_v23, %v1472_v31  ;;  %v2332_v39 = vand.u32 4294901760, %v4884_v16  ;;  %v1365_v52 = vand.u32 4294901760, %v4909_v48 }
 0x110   : > { %5902 = vst [vmem:[#allocation60_spill] sm:$0xff] %v4911_v12  ;;  %5903 = vst [vmem:[#allocation61_spill] sm:$0xff] %v4913_v42  ;;  %v1358_v5 = vand.u32 4294901760, %v4911_v12  ;;  %v2082_v21 = vand.u32 4294901760, %v1131_v7  ;;  %v2079_v29 = vand.u32 4294901760, %v1128_v26  ;;  %3459 = vmatpush3.bf16.xpose.msra.mxu0 %v4913_v42  ;;  %748 = vrot.lane.b32.xlu1 %v4816_v51, %s3975_s30  ;;  %v1011_v23 = vsel %vm1009_vm2, %v1008_v45, 0 }
 0x111   : > { %746 = vrot.lane.b32.xlu0 %v4819_v33, %s3975_s30  ;;  %v2326_v31 = vsub.f32 %v4886_v1, %v2325_v11  ;;  %v4941_v10 = vand.u32 4294901760, %v1011_v23  ;;  %v2333_v17 = vsub.f32 %v4884_v16, %v2332_v39  ;;  %v1366_v56 = vsub.f32 %v4909_v48, %v1365_v52  ;;  %v310_v48 = vld [vmem:[%s4291_s6 + $0x40] sm:$0xff]  ;;  %v3894_v16 = vld [vmem:[%s4054_s28 + $0x148] sm:$0xff] }
 0x112   : > { %v4935_v61 = vsub.f32 %v1131_v7, %v2082_v21  ;;  %v4937_v63 = vsub.f32 %v1128_v26, %v2079_v29  ;;  %v4939_v30 = vpack.c.bf16 %v2082_v21, %v2079_v29  ;;  %v545_v42 = vpop.permute.xlu1 %544  ;;  %v1359_v8 = vsub.f32 %v4911_v12, %v1358_v5  ;;  %v311_v12 = vld [vmem:[%s4291_s6 + $0x48] sm:$0xff] }
 0x113   : > { %v543_v13 = vpop.permute.xlu0 %542  ;;  %v2327_v35 = vand.u32 4294901760, %v2326_v31  ;;  %v4954_v26 = vsub.f32 %v1011_v23, %v4941_v10  ;;  %v2334_v21 = vand.u32 4294901760, %v2333_v17  ;;  %v1367_v31 = vand.u32 4294901760, %v1366_v56 }
 0x114   : > { %5904 = vst [vmem:[#allocation62_spill] sm:$0xff] %v4935_v61  ;;  %5905 = vst [vmem:[#allocation63_spill] sm:$0xff] %v4937_v63  ;;  %v2220_v45 = vand.u32 4294901760, %v4935_v61  ;;  %v2213_v7 = vand.u32 4294901760, %v4937_v63  ;;  %3651 = vmatpush3.bf16.xpose.msra.mxu1 %v4939_v30  ;;  %652 = vrot.lane.b32.xlu1 %v4834_v24, %s3975_s30  ;;  %v1360_v29 = vand.u32 4294901760, %v1359_v8  ;;  %v4987_v56 = vpack.c.bf16 %v1365_v52, %v1358_v5  ;;  %v3889_v52 = vld [vmem:[%s4054_s28 + $0xc0] sm:$0xff] }
 0x115   : > { %5906 = vst [vmem:[#allocation64_spill] sm:$0xff] %v4939_v30  ;;  %650 = vrot.lane.b32.xlu0 %v4837_v19, %s3975_s30  ;;  %5907 = vst [vmem:[#allocation65_spill] sm:$0xff] %v4954_v26  ;;  %v4963_v0 = vand.u32 4294901760, %v4954_v26  ;;  %v4965_v23 = vpack.c.bf16 %v2334_v21, %v2327_v35  ;;  %v5909_v21 = vand.u32 4294901760, %v4858_v25  ;;  %v839_v5 = vsel %vm814_vm0, %v3889_v52, %v4918_v40 }
 0x116   : > { %v2214_v47 = vsub.f32 %v4937_v63, %v2213_v7  ;;  %v2221_v6 = vsub.f32 %v4935_v61, %v2220_v45  ;;  %v449_v32 = vpop.permute.xlu1 %448  ;;  %v4967_v17 = vpack.c.bf16 %v1367_v31, %v1360_v29  ;;  %v5910_v29 = vand.u32 4294901760, %v4856_v36  ;;  %5913 = vst [vmem:[#allocation69_spill] sm:$0xff] %v4987_v56  ;;  %v359_v56 = vld [vmem:[%s4291_s6 + $0x1c8] sm:$0xff] }
 0x117   : > { %v447_v9 = vpop.permute.xlu0 %446  ;;  %5908 = vst [vmem:[#allocation66_spill] sm:$0xff] %v4963_v0  ;;  %v1305_v35 = vsub.f32 %v4954_v26, %v4963_v0  ;;  %v4989_v30 = vpack.c.bf16 %v2220_v45, %v2213_v7 }
 0x118   : > { %v2215_v8 = vand.u32 4294901760, %v2214_v47  ;;  %v2222_v55 = vand.u32 4294901760, %v2221_v6  ;;  %716 = vrot.lane.b32.xlu1 %v4864_v28, %s3975_s30  ;;  %v4981_v31 = vpack.c.bf16 %v5910_v29, %v5909_v21  ;;  %v4983_v47 = vpack.c.bf16 %v2332_v39, %v2325_v11  ;;  %v327_v21 = vld [vmem:[%s4291_s6 + $0xc8] sm:$0xff]  ;;  %v326_v11 = vld [vmem:[%s4291_s6 + $0xc0] sm:$0xff] }
 0x119   : > { %714 = vrot.lane.b32.xlu0 %v4867_v4, %s3975_s30  ;;  %5914 = vst [vmem:[#allocation70_spill] sm:$0xff] %v4989_v30  ;;  %v4991_v61 = vand.u32 4294901760, %v1305_v35 }
 0x11a   : > { %5911 = vst [vmem:[#allocation67_spill] sm:$0xff] %v4981_v31  ;;  %5912 = vst [vmem:[#allocation68_spill] sm:$0xff] %v4983_v47  ;;  %v4985_v6 = vpack.c.bf16 %v2222_v55, %v2215_v8  ;;  %v513_v2 = vpop.permute.xlu1 %512  ;;  %v3888_v55 = vld [vmem:[%s4054_s28 + $0xc8] sm:$0xff]  ;;  %v358_v47 = vld [vmem:[%s4291_s6 + $0x1c0] sm:$0xff] }
 0x11b   : > { %v511_v63 = vpop.permute.xlu0 %510  ;;  %3068 = vmatprep.mubr.f32.mxu0 %v4991_v61  ;;  %3272 = vmatprep.mubr.f32.mxu1 %v4991_v61  ;;  %v840_v39 = vsel %vm814_vm0, %v3888_v55, %v481_v27  ;;  %v3890_v31 = vld [vmem:[%s4054_s28 + $0x1c8] sm:$0xff]  ;;  %v3891_v27 = vld [vmem:[%s4054_s28 + $0x1c0] sm:$0xff] }
 0x11c   : > { %v872_v0 = vsel %vm814_vm0, %v3890_v31, %v545_v42  ;;  %v871_v55 = vsel %vm814_vm0, %v3891_v27, %v543_v13  ;;  %v3892_v42 = vld [vmem:[%s4054_s28 + $0x48] sm:$0xff] }
 0x11d   : > { %v824_v31 = vsel %vm814_vm0, %v3892_v42, %v449_v32  ;;  %v343_v42 = vld [vmem:[%s4291_s6 + $0x148] sm:$0xff] }
 0x11e   : > { %v673_v45 = vpop.permute.xlu1 %672 }
 0x11f   : > { %v671_v7 = vpop.permute.xlu0 %670  ;;  %v905_v8 = vsel %vm879_vm1, %v840_v39, %v673_v45 }
 0x120   : > { %v904_v35 = vsel %vm879_vm1, %v839_v5, %v671_v7  ;;  %v969_v29 = vmul.f32 %v905_v8, %v327_v21 }
 0x121   : > { %v968_v30 = vmul.f32 %v904_v35, %v326_v11  ;;  %v3893_v35 = vld [vmem:[%s4054_s28 + $0x40] sm:$0xff] }
 0x122   : > { %v1089_v40 = vsel %vm1009_vm2, %v969_v29, 0  ;;  %v737_v39 = vpop.permute.xlu1 %736  ;;  %v823_v29 = vsel %vm814_vm0, %v3893_v35, %v447_v9 }
 0x123   : > { %v1086_v52 = vsel %vm1009_vm2, %v968_v30, 0  ;;  %v735_v5 = vpop.permute.xlu0 %734  ;;  %v1281_v21 = vand.u32 4294901760, %v1089_v40  ;;  %v937_v45 = vsel %vm879_vm1, %v872_v0, %v737_v39  ;;  %v856_v0 = vsel %vm814_vm0, %v3894_v16, %v513_v2 }
 0x124   : > { %v1278_v11 = vand.u32 4294901760, %v1086_v52  ;;  %v936_v7 = vsel %vm879_vm1, %v871_v55, %v735_v5  ;;  %v1001_v13 = vmul.f32 %v937_v45, %v359_v56  ;;  %v3895_v55 = vld [vmem:[%s4054_s28 + $0x140] sm:$0xff] }
 0x125   : > { %v1000_v8 = vmul.f32 %v936_v7, %v358_v47  ;;  %v5018_v30 = vsub.f32 %v1089_v40, %v1281_v21  ;;  %v855_v39 = vsel %vm814_vm0, %v3895_v55, %v511_v63 }
 0x126   : > { %v5020_v27 = vsub.f32 %v1086_v52, %v1278_v11  ;;  %v5024_v1 = vpack.c.bf16 %v1281_v21, %v1278_v11  ;;  %v1185_v32 = vsel %vm1009_vm2, %v1001_v13, 0  ;;  %v641_v56 = vpop.permute.xlu1 %640  ;;  %v342_v13 = vld [vmem:[%s4291_s6 + $0x140] sm:$0xff] }
 0x127   : > { %5915 = vst [vmem:[#allocation71_spill] sm:$0xff] %v5018_v30  ;;  %v1182_v9 = vsel %vm1009_vm2, %v1000_v8, 0  ;;  %v639_v47 = vpop.permute.xlu0 %638  ;;  %v2136_v40 = vand.u32 4294901760, %v1185_v32  ;;  %v889_v5 = vsel %vm879_vm1, %v824_v31, %v641_v56  ;;  %v1491_v11 = vand.u32 4294901760, %v5018_v30 }
 0x128   : > { %5916 = vst [vmem:[#allocation72_spill] sm:$0xff] %v5020_v27  ;;  %5917 = vst [vmem:[#allocation73_spill] sm:$0xff] %v5024_v1  ;;  %v2133_v52 = vand.u32 4294901760, %v1182_v9  ;;  %v888_v21 = vsel %vm879_vm1, %v823_v29, %v639_v47  ;;  %3461 = vmatprep.subr.bf16.mxu0 %v5024_v1  ;;  %v953_v2 = vmul.f32 %v889_v5, %v311_v12  ;;  %v1484_v63 = vand.u32 4294901760, %v5020_v27 }
 0x129   : > { %v952_v16 = vmul.f32 %v888_v21, %v310_v48  ;;  %v5037_v45 = vsub.f32 %v1185_v32, %v2136_v40  ;;  %v1492_v32 = vsub.f32 %v5018_v30, %v1491_v11 }
 0x12a   : > { %v5039_v7 = vsub.f32 %v1182_v9, %v2133_v52  ;;  %v5043_v8 = vpack.c.bf16 %v2136_v40, %v2133_v52  ;;  %v1041_v35 = vsel %vm1009_vm2, %v953_v2, 0  ;;  %v705_v48 = vpop.permute.xlu1 %704  ;;  %v1485_v55 = vsub.f32 %v5020_v27, %v1484_v63 }
 0x12b   : > { %5918 = vst [vmem:[#allocation74_spill] sm:$0xff] %v5037_v45  ;;  %v1038_v12 = vsel %vm1009_vm2, %v952_v16, 0  ;;  %v703_v29 = vpop.permute.xlu0 %702  ;;  %v1233_v56 = vand.u32 4294901760, %v1041_v35  ;;  %v921_v47 = vsel %vm879_vm1, %v856_v0, %v705_v48  ;;  %v1493_v2 = vand.u32 4294901760, %v1492_v32 }
 0x12c   : > { %5919 = vst [vmem:[#allocation75_spill] sm:$0xff] %v5039_v7  ;;  %5920 = vst [vmem:[#allocation76_spill] sm:$0xff] %v5043_v8  ;;  %v1230_v9 = vand.u32 4294901760, %v1038_v12  ;;  %v920_v40 = vsel %vm879_vm1, %v855_v39, %v703_v29  ;;  %3653 = vmatprep.subr.bf16.mxu1 %v5043_v8  ;;  %v985_v52 = vmul.f32 %v921_v47, %v343_v42  ;;  %v1486_v21 = vand.u32 4294901760, %v1485_v55 }
 0x12d   : > { %v984_v5 = vmul.f32 %v920_v40, %v342_v13  ;;  %v5054_v31 = vsub.f32 %v1041_v35, %v1233_v56  ;;  %v2339_v27 = vand.u32 4294901760, %v5039_v7  ;;  %v2346_v42 = vand.u32 4294901760, %v5037_v45 }
 0x12e   : > { %v5056_v16 = vsub.f32 %v1038_v12, %v1230_v9  ;;  %v5058_v1 = vpack.c.bf16 %v1233_v56, %v1230_v9  ;;  %v1137_v30 = vsel %vm1009_vm2, %v985_v52, 0  ;;  %v485_v48 = vpop.permute.xlu1 %484  ;;  %v5063_v29 = vpack.c.bf16 %v1493_v2, %v1486_v21 }
 0x12f   : > { %5921 = vst [vmem:[#allocation77_spill] sm:$0xff] %v5054_v31  ;;  %v1134_v0 = vsel %vm1009_vm2, %v984_v5, 0  ;;  %v483_v39 = vpop.permute.xlu0 %482  ;;  %v1379_v13 = vand.u32 4294901760, %v5054_v31  ;;  %v2088_v12 = vand.u32 4294901760, %v1137_v30  ;;  %v2340_v32 = vsub.f32 %v5039_v7, %v2339_v27 }
 0x130   : > { %5922 = vst [vmem:[#allocation78_spill] sm:$0xff] %v5056_v16  ;;  %5923 = vst [vmem:[#allocation79_spill] sm:$0xff] %v5058_v1  ;;  %v1372_v35 = vand.u32 4294901760, %v5056_v16  ;;  %v2085_v55 = vand.u32 4294901760, %v1134_v0  ;;  %3463 = vmatpush3.bf16.xpose.msra.mxu0 %v5058_v1  ;;  %v2347_v56 = vsub.f32 %v5037_v45, %v2346_v42  ;;  %v5092_v7 = vpack.c.bf16 %v1491_v11, %v1484_v63  ;;  %v329_v11 = vld [vmem:[%s4291_s6 + $0xd8] sm:$0xff] }
 0x131   : > { %v5071_v9 = vsub.f32 %v1137_v30, %v2088_v12  ;;  %v2341_v2 = vand.u32 4294901760, %v2340_v32  ;;  %v1380_v25 = vsub.f32 %v5054_v31, %v1379_v13 }
 0x132   : > { %v5073_v47 = vsub.f32 %v1134_v0, %v2085_v55  ;;  %v5075_v40 = vpack.c.bf16 %v2088_v12, %v2085_v55  ;;  %v1373_v52 = vsub.f32 %v5056_v16, %v1372_v35  ;;  %v549_v5 = vpop.permute.xlu1 %548  ;;  %v2348_v8 = vand.u32 4294901760, %v2347_v56  ;;  %5927 = vst [vmem:[#allocation83_spill] sm:$0xff] %v5092_v7  ;;  %v328_v7 = vld [vmem:[%s4291_s6 + $0xd0] sm:$0xff] }
 0x133   : > { %5924 = vst [vmem:[#allocation80_spill] sm:$0xff] %v5071_v9  ;;  %v547_v21 = vpop.permute.xlu0 %546  ;;  %v2234_v36 = vand.u32 4294901760, %v5071_v9  ;;  %v1381_v55 = vand.u32 4294901760, %v1380_v25  ;;  %v5096_v25 = vpack.c.bf16 %v2346_v42, %v2339_v27  ;;  %v5098_v26 = vpack.c.bf16 %v1379_v13, %v1372_v35  ;;  %v3897_v42 = vld [vmem:[%s4054_s28 + $0xd0] sm:$0xff] }
 0x134   : > { %5925 = vst [vmem:[#allocation81_spill] sm:$0xff] %v5073_v47  ;;  %5926 = vst [vmem:[#allocation82_spill] sm:$0xff] %v5075_v40  ;;  %v2227_v30 = vand.u32 4294901760, %v5073_v47  ;;  %3655 = vmatpush3.bf16.xpose.msra.mxu1 %v5075_v40  ;;  %v5084_v0 = vpack.c.bf16 %v2348_v8, %v2341_v2  ;;  %v1374_v12 = vand.u32 4294901760, %v1373_v52  ;;  %v841_v13 = vsel %vm814_vm0, %v3897_v42, %v483_v39 }
 0x135   : > { %v2235_v56 = vsub.f32 %v5071_v9, %v2234_v36  ;;  %5928 = vst [vmem:[#allocation84_spill] sm:$0xff] %v5096_v25  ;;  %5929 = vst [vmem:[#allocation85_spill] sm:$0xff] %v5098_v26  ;;  %v3899_v25 = vld [vmem:[%s4054_s28 + $0x1d0] sm:$0xff] }
 0x136   : > { %v2228_v32 = vsub.f32 %v5073_v47, %v2227_v30  ;;  %v453_v8 = vpop.permute.xlu1 %452  ;;  %v5094_v52 = vpack.c.bf16 %v1381_v55, %v1374_v12  ;;  %v5100_v40 = vpack.c.bf16 %v2234_v36, %v2227_v30  ;;  %v3896_v12 = vld [vmem:[%s4054_s28 + $0xd8] sm:$0xff]  ;;  %v312_v47 = vld [vmem:[%s4291_s6 + $0x50] sm:$0xff] }
 0x137   : > { %v451_v2 = vpop.permute.xlu0 %450  ;;  %v2236_v31 = vand.u32 4294901760, %v2235_v56  ;;  %v842_v27 = vsel %vm814_vm0, %v3896_v12, %v485_v48  ;;  %v360_v56 = vld [vmem:[%s4291_s6 + $0x1d0] sm:$0xff]  ;;  %v873_v48 = vsel %vm814_vm0, %v3899_v25, %v547_v21 }
 0x138   : > { %5930 = vst [vmem:[#allocation86_spill] sm:$0xff] %v5100_v40  ;;  %v2229_v16 = vand.u32 4294901760, %v2228_v32  ;;  %v361_v32 = vld [vmem:[%s4291_s6 + $0x1d8] sm:$0xff] }
 0x139   : > { %v3898_v40 = vld [vmem:[%s4054_s28 + $0x1d8] sm:$0xff] }
 0x13a   : > { %v5102_v45 = vpack.c.bf16 %v2236_v31, %v2229_v16  ;;  %v517_v1 = vpop.permute.xlu1 %516  ;;  %v874_v26 = vsel %vm814_vm0, %v3898_v40, %v549_v5  ;;  %v3900_v40 = vld [vmem:[%s4054_s28 + $0x58] sm:$0xff] }
 0x13b   : > { %v515_v63 = vpop.permute.xlu0 %514  ;;  %v826_v5 = vsel %vm814_vm0, %v3900_v40, %v453_v8  ;;  %v345_v40 = vld [vmem:[%s4291_s6 + $0x158] sm:$0xff] }
 0x13e   : > { %v677_v36 = vpop.permute.xlu1 %676 }
 0x13f   : > { %v675_v35 = vpop.permute.xlu0 %674  ;;  %v907_v30 = vsel %vm879_vm1, %v842_v27, %v677_v36 }
 0x140   : > { %v906_v31 = vsel %vm879_vm1, %v841_v13, %v675_v35  ;;  %v971_v16 = vmul.f32 %v907_v30, %v329_v11  ;;  %v3901_v35 = vld [vmem:[%s4054_s28 + $0x50] sm:$0xff] }
 0x141   : > { %v970_v55 = vmul.f32 %v906_v31, %v328_v7  ;;  %v825_v30 = vsel %vm814_vm0, %v3901_v35, %v451_v2 }
 0x142   : > { %v1095_v39 = vsel %vm1009_vm2, %v971_v16, 0  ;;  %v741_v27 = vpop.permute.xlu1 %740 }
 0x143   : > { %v1092_v12 = vsel %vm1009_vm2, %v970_v55, 0  ;;  %v739_v42 = vpop.permute.xlu0 %738  ;;  %v1287_v11 = vand.u32 4294901760, %v1095_v39  ;;  %v939_v13 = vsel %vm879_vm1, %v874_v26, %v741_v27  ;;  %v313_v55 = vld [vmem:[%s4291_s6 + $0x58] sm:$0xff]  ;;  %v858_v26 = vsel %vm814_vm0, %v3902_v54, %v517_v1 }
 0x144   : > { %v1284_v7 = vand.u32 4294901760, %v1092_v12  ;;  %v938_v36 = vsel %vm879_vm1, %v873_v48, %v739_v42  ;;  %v1003_v21 = vmul.f32 %v939_v13, %v361_v32  ;;  %v3903_v48 = vld [vmem:[%s4054_s28 + $0x150] sm:$0xff] }
 0x145   : > { %v1002_v25 = vmul.f32 %v938_v36, %v360_v56  ;;  %v5126_v31 = vsub.f32 %v1095_v39, %v1287_v11  ;;  %v857_v27 = vsel %vm814_vm0, %v3903_v48, %v515_v63 }
 0x146   : > { %v5128_v16 = vsub.f32 %v1092_v12, %v1284_v7  ;;  %v5132_v9 = vpack.c.bf16 %v1287_v11, %v1284_v7  ;;  %v1191_v8 = vsel %vm1009_vm2, %v1003_v21, 0  ;;  %v645_v32 = vpop.permute.xlu1 %644  ;;  %v344_v21 = vld [vmem:[%s4291_s6 + $0x150] sm:$0xff] }
 0x147   : > { %5931 = vst [vmem:[#allocation87_spill] sm:$0xff] %v5126_v31  ;;  %v1188_v2 = vsel %vm1009_vm2, %v1002_v25, 0  ;;  %v643_v56 = vpop.permute.xlu0 %642  ;;  %v2142_v39 = vand.u32 4294901760, %v1191_v8  ;;  %v891_v42 = vsel %vm879_vm1, %v826_v5, %v645_v32  ;;  %v1505_v7 = vand.u32 4294901760, %v5126_v31 }
 0x148   : > { %5932 = vst [vmem:[#allocation88_spill] sm:$0xff] %v5128_v16  ;;  %5933 = vst [vmem:[#allocation89_spill] sm:$0xff] %v5132_v9  ;;  %v2139_v12 = vand.u32 4294901760, %v1188_v2  ;;  %v890_v11 = vsel %vm879_vm1, %v825_v30, %v643_v56  ;;  %3465 = vmatprep.subr.bf16.mxu0 %v5132_v9  ;;  %v955_v54 = vmul.f32 %v891_v42, %v313_v55  ;;  %v1498_v63 = vand.u32 4294901760, %v5128_v16 }
 0x149   : > { %v954_v1 = vmul.f32 %v890_v11, %v312_v47  ;;  %v5145_v13 = vsub.f32 %v1191_v8, %v2142_v39  ;;  %v1506_v8 = vsub.f32 %v5126_v31, %v1505_v7 }
 0x14a   : > { %v5147_v36 = vsub.f32 %v1188_v2, %v2139_v12  ;;  %v5151_v25 = vpack.c.bf16 %v2142_v39, %v2139_v12  ;;  %v1047_v35 = vsel %vm1009_vm2, %v955_v54, 0  ;;  %v709_v47 = vpop.permute.xlu1 %708  ;;  %v1499_v48 = vsub.f32 %v5128_v16, %v1498_v63 }
 0x14b   : > { %5934 = vst [vmem:[#allocation90_spill] sm:$0xff] %v5145_v13  ;;  %v1044_v30 = vsel %vm1009_vm2, %v954_v1, 0  ;;  %v707_v55 = vpop.permute.xlu0 %706  ;;  %v1239_v32 = vand.u32 4294901760, %v1047_v35  ;;  %v923_v56 = vsel %vm879_vm1, %v858_v26, %v709_v47  ;;  %v1507_v54 = vand.u32 4294901760, %v1506_v8 }
 0x14c   : > { %5935 = vst [vmem:[#allocation91_spill] sm:$0xff] %v5147_v36  ;;  %5936 = vst [vmem:[#allocation92_spill] sm:$0xff] %v5151_v25  ;;  %v1236_v2 = vand.u32 4294901760, %v1044_v30  ;;  %v922_v39 = vsel %vm879_vm1, %v857_v27, %v707_v55  ;;  %3657 = vmatprep.subr.bf16.mxu1 %v5151_v25  ;;  %v987_v12 = vmul.f32 %v923_v56, %v345_v40  ;;  %v1500_v11 = vand.u32 4294901760, %v1499_v48 }
 0x14d   : > { %v986_v42 = vmul.f32 %v922_v39, %v344_v21  ;;  %v5162_v5 = vsub.f32 %v1047_v35, %v1239_v32  ;;  %v2353_v16 = vand.u32 4294901760, %v5147_v36  ;;  %v2360_v40 = vand.u32 4294901760, %v5145_v13 }
 0x14e   : > { %v5164_v1 = vsub.f32 %v1044_v30, %v1236_v2  ;;  %v5166_v9 = vpack.c.bf16 %v1239_v32, %v1236_v2  ;;  %v1143_v31 = vsel %vm1009_vm2, %v987_v12, 0  ;;  %v489_v47 = vpop.permute.xlu1 %488  ;;  %v5171_v55 = vpack.c.bf16 %v1507_v54, %v1500_v11 }
 0x14f   : > { %5937 = vst [vmem:[#allocation93_spill] sm:$0xff] %v5162_v5  ;;  %v1140_v26 = vsel %vm1009_vm2, %v986_v42, 0  ;;  %v487_v27 = vpop.permute.xlu0 %486  ;;  %v1393_v21 = vand.u32 4294901760, %v5162_v5  ;;  %v2094_v30 = vand.u32 4294901760, %v1143_v31  ;;  %v2354_v8 = vsub.f32 %v5147_v36, %v2353_v16 }
 0x150   : > { %5938 = vst [vmem:[#allocation94_spill] sm:$0xff] %v5164_v1  ;;  %5939 = vst [vmem:[#allocation95_spill] sm:$0xff] %v5166_v9  ;;  %v1386_v35 = vand.u32 4294901760, %v5164_v1  ;;  %v2091_v48 = vand.u32 4294901760, %v1140_v26  ;;  %3467 = vmatpush3.bf16.xpose.msra.mxu0 %v5166_v9  ;;  %v2361_v32 = vsub.f32 %v5145_v13, %v2360_v40  ;;  %v5200_v36 = vpack.c.bf16 %v1505_v7, %v1498_v63  ;;  %v331_v7 = vld [vmem:[%s4291_s6 + $0xe8] sm:$0xff] }
 0x151   : > { %v5179_v2 = vsub.f32 %v1143_v31, %v2094_v30  ;;  %v2355_v54 = vand.u32 4294901760, %v2354_v8  ;;  %v1394_v60 = vsub.f32 %v5162_v5, %v1393_v21 }
 0x152   : > { %v5181_v56 = vsub.f32 %v1140_v26, %v2091_v48  ;;  %v5183_v39 = vpack.c.bf16 %v2094_v30, %v2091_v48  ;;  %v1387_v12 = vsub.f32 %v5164_v1, %v1386_v35  ;;  %v553_v42 = vpop.permute.xlu1 %552  ;;  %v2362_v25 = vand.u32 4294901760, %v2361_v32  ;;  %5943 = vst [vmem:[#allocation99_spill] sm:$0xff] %v5200_v36  ;;  %v330_v36 = vld [vmem:[%s4291_s6 + $0xe0] sm:$0xff] }
 0x153   : > { %5940 = vst [vmem:[#allocation96_spill] sm:$0xff] %v5179_v2  ;;  %v551_v11 = vpop.permute.xlu0 %550  ;;  %v2248_v59 = vand.u32 4294901760, %v5179_v2  ;;  %v1395_v48 = vand.u32 4294901760, %v1394_v60  ;;  %v5204_v60 = vpack.c.bf16 %v2360_v40, %v2353_v16  ;;  %v5206_v46 = vpack.c.bf16 %v1393_v21, %v1386_v35  ;;  %v3905_v40 = vld [vmem:[%s4054_s28 + $0xe0] sm:$0xff] }
 0x154   : > { %5941 = vst [vmem:[#allocation97_spill] sm:$0xff] %v5181_v56  ;;  %5942 = vst [vmem:[#allocation98_spill] sm:$0xff] %v5183_v39  ;;  %v2241_v31 = vand.u32 4294901760, %v5181_v56  ;;  %3659 = vmatpush3.bf16.xpose.msra.mxu1 %v5183_v39  ;;  %v5192_v26 = vpack.c.bf16 %v2362_v25, %v2355_v54  ;;  %v1388_v30 = vand.u32 4294901760, %v1387_v12  ;;  %v843_v21 = vsel %vm814_vm0, %v3905_v40, %v487_v27 }
 0x155   : > { %v2249_v32 = vsub.f32 %v5179_v2, %v2248_v59  ;;  %5944 = vst [vmem:[#allocation100_spill] sm:$0xff] %v5204_v60  ;;  %5945 = vst [vmem:[#allocation101_spill] sm:$0xff] %v5206_v46  ;;  %v3907_v60 = vld [vmem:[%s4054_s28 + $0x1e0] sm:$0xff] }
 0x156   : > { %v2242_v8 = vsub.f32 %v5181_v56, %v2241_v31  ;;  %v457_v25 = vpop.permute.xlu1 %456  ;;  %v5202_v12 = vpack.c.bf16 %v1395_v48, %v1388_v30  ;;  %v5208_v39 = vpack.c.bf16 %v2248_v59, %v2241_v31  ;;  %v3904_v30 = vld [vmem:[%s4054_s28 + $0xe8] sm:$0xff]  ;;  %v314_v56 = vld [vmem:[%s4291_s6 + $0x60] sm:$0xff] }
 0x157   : > { %v455_v54 = vpop.permute.xlu0 %454  ;;  %v2250_v5 = vand.u32 4294901760, %v2249_v32  ;;  %v844_v16 = vsel %vm814_vm0, %v3904_v30, %v489_v47  ;;  %v362_v32 = vld [vmem:[%s4291_s6 + $0x1e0] sm:$0xff]  ;;  %v875_v47 = vsel %vm814_vm0, %v3907_v60, %v551_v11 }
 0x158   : > { %5946 = vst [vmem:[#allocation102_spill] sm:$0xff] %v5208_v39  ;;  %v2243_v1 = vand.u32 4294901760, %v2242_v8  ;;  %v363_v8 = vld [vmem:[%s4291_s6 + $0x1e8] sm:$0xff]  ;;  %v3909_v11 = vld [vmem:[%s4054_s28 + $0x60] sm:$0xff] }
 0x159   : > { %v3906_v39 = vld [vmem:[%s4054_s28 + $0x1e8] sm:$0xff]  ;;  %v827_v60 = vsel %vm814_vm0, %v3909_v11, %v455_v54 }
 0x15a   : > { %v5210_v13 = vpack.c.bf16 %v2250_v5, %v2243_v1  ;;  %v521_v9 = vpop.permute.xlu1 %520  ;;  %v876_v46 = vsel %vm814_vm0, %v3906_v39, %v553_v42 }
 0x15b   : > { %v519_v63 = vpop.permute.xlu0 %518 }
 0x15c   : > { %5947 = vst [vmem:[#allocation103_spill] sm:$0xff] %v5210_v13 }
 0x15e   : > { %v681_v59 = vpop.permute.xlu1 %680 }
 0x15f   : > { %v679_v35 = vpop.permute.xlu0 %678  ;;  %v909_v31 = vsel %vm879_vm1, %v844_v16, %v681_v59 }
 0x160   : > { %v908_v5 = vsel %vm879_vm1, %v843_v21, %v679_v35  ;;  %v973_v1 = vmul.f32 %v909_v31, %v331_v7  ;;  %v3908_v35 = vld [vmem:[%s4054_s28 + $0x68] sm:$0xff] }
 0x161   : > { %v972_v48 = vmul.f32 %v908_v5, %v330_v36  ;;  %v828_v39 = vsel %vm814_vm0, %v3908_v35, %v457_v25 }
 0x162   : > { %v1101_v27 = vsel %vm1009_vm2, %v973_v1, 0  ;;  %v745_v16 = vpop.permute.xlu1 %744 }
 0x163   : > { %v1098_v30 = vsel %vm1009_vm2, %v972_v48, 0  ;;  %v743_v40 = vpop.permute.xlu0 %742  ;;  %v1293_v7 = vand.u32 4294901760, %v1101_v27  ;;  %v941_v36 = vsel %vm879_vm1, %v876_v46, %v745_v16  ;;  %v315_v48 = vld [vmem:[%s4291_s6 + $0x68] sm:$0xff]  ;;  %v860_v46 = vsel %vm814_vm0, %v4692_v20, %v521_v9 }
 0x164   : > { %v1290_v21 = vand.u32 4294901760, %v1098_v30  ;;  %v940_v59 = vsel %vm879_vm1, %v875_v47, %v743_v40  ;;  %v1005_v42 = vmul.f32 %v941_v36, %v363_v8  ;;  %v859_v47 = vsel %vm814_vm0, %v4695_v62, %v519_v63  ;;  %v347_v36 = vld [vmem:[%s4291_s6 + $0x168] sm:$0xff] }
 0x165   : > { %v1004_v31 = vmul.f32 %v940_v59, %v362_v32  ;;  %v5234_v5 = vsub.f32 %v1101_v27, %v1293_v7  ;;  %v346_v59 = vld [vmem:[%s4291_s6 + $0x160] sm:$0xff] }
 0x166   : > { %v5236_v1 = vsub.f32 %v1098_v30, %v1290_v21  ;;  %v5240_v2 = vpack.c.bf16 %v1293_v7, %v1290_v21  ;;  %v1197_v25 = vsel %vm1009_vm2, %v1005_v42, 0  ;;  %v649_v8 = vpop.permute.xlu1 %648 }
 0x167   : > { %5948 = vst [vmem:[#allocation104_spill] sm:$0xff] %v5234_v5  ;;  %v1194_v54 = vsel %vm1009_vm2, %v1004_v31, 0  ;;  %v647_v32 = vpop.permute.xlu0 %646  ;;  %v2148_v27 = vand.u32 4294901760, %v1197_v25  ;;  %v893_v16 = vsel %vm879_vm1, %v828_v39, %v649_v8  ;;  %v1519_v63 = vand.u32 4294901760, %v5234_v5 }
 0x168   : > { %5949 = vst [vmem:[#allocation105_spill] sm:$0xff] %v5236_v1  ;;  %5950 = vst [vmem:[#allocation106_spill] sm:$0xff] %v5240_v2  ;;  %v2145_v30 = vand.u32 4294901760, %v1194_v54  ;;  %v892_v40 = vsel %vm879_vm1, %v827_v60, %v647_v32  ;;  %3469 = vmatprep.subr.bf16.mxu0 %v5240_v2  ;;  %v957_v20 = vmul.f32 %v893_v16, %v315_v48  ;;  %v1512_v62 = vand.u32 4294901760, %v5236_v1 }
 0x169   : > { %v956_v9 = vmul.f32 %v892_v40, %v314_v56  ;;  %v5253_v7 = vsub.f32 %v1197_v25, %v2148_v27  ;;  %v1520_v48 = vsub.f32 %v5234_v5, %v1519_v63 }
 0x16a   : > { %v5255_v21 = vsub.f32 %v1194_v54, %v2145_v30  ;;  %v5259_v35 = vpack.c.bf16 %v2148_v27, %v2145_v30  ;;  %v1053_v42 = vsel %vm1009_vm2, %v957_v20, 0  ;;  %v713_v56 = vpop.permute.xlu1 %712  ;;  %v1513_v60 = vsub.f32 %v5236_v1, %v1512_v62 }
 0x16b   : > { %5951 = vst [vmem:[#allocation107_spill] sm:$0xff] %v5253_v7  ;;  %v1050_v31 = vsel %vm1009_vm2, %v956_v9, 0  ;;  %v711_v11 = vpop.permute.xlu0 %710  ;;  %v1245_v25 = vand.u32 4294901760, %v1053_v42  ;;  %v925_v8 = vsel %vm879_vm1, %v860_v46, %v713_v56  ;;  %v1521_v40 = vand.u32 4294901760, %v1520_v48 }
 0x16c   : > { %5952 = vst [vmem:[#allocation108_spill] sm:$0xff] %v5255_v21  ;;  %5953 = vst [vmem:[#allocation109_spill] sm:$0xff] %v5259_v35  ;;  %v1242_v54 = vand.u32 4294901760, %v1050_v31  ;;  %v924_v32 = vsel %vm879_vm1, %v859_v47, %v711_v11  ;;  %3661 = vmatprep.subr.bf16.mxu1 %v5259_v35  ;;  %v989_v27 = vmul.f32 %v925_v8, %v347_v36  ;;  %v1514_v16 = vand.u32 4294901760, %v1513_v60 }
 0x16d   : > { %v988_v30 = vmul.f32 %v924_v32, %v346_v59  ;;  %v5270_v20 = vsub.f32 %v1053_v42, %v1245_v25  ;;  %v2367_v2 = vand.u32 4294901760, %v5255_v21  ;;  %v2374_v36 = vand.u32 4294901760, %v5253_v7 }
 0x16e   : > { %v5272_v9 = vsub.f32 %v1050_v31, %v1242_v54  ;;  %v5274_v39 = vpack.c.bf16 %v1245_v25, %v1242_v54  ;;  %v1149_v1 = vsel %vm1009_vm2, %v989_v27, 0  ;;  %v493_v56 = vpop.permute.xlu1 %492  ;;  %v5279_v11 = vpack.c.bf16 %v1521_v40, %v1514_v16 }
 0x16f   : > { %5954 = vst [vmem:[#allocation110_spill] sm:$0xff] %v5270_v20  ;;  %v1146_v46 = vsel %vm1009_vm2, %v988_v30, 0  ;;  %v491_v47 = vpop.permute.xlu0 %490  ;;  %v1407_v59 = vand.u32 4294901760, %v5270_v20  ;;  %v2100_v31 = vand.u32 4294901760, %v1149_v1  ;;  %v2368_v48 = vsub.f32 %v5255_v21, %v2367_v2 }
 0x170   : > { %5955 = vst [vmem:[#allocation111_spill] sm:$0xff] %v5272_v9  ;;  %5956 = vst [vmem:[#allocation112_spill] sm:$0xff] %v5274_v39  ;;  %v1400_v42 = vand.u32 4294901760, %v5272_v9  ;;  %v2097_v60 = vand.u32 4294901760, %v1146_v46  ;;  %3471 = vmatpush3.bf16.xpose.msra.mxu0 %v5274_v39  ;;  %v2375_v25 = vsub.f32 %v5253_v7, %v2374_v36  ;;  %v5308_v21 = vpack.c.bf16 %v1519_v63, %v1512_v62  ;;  %v333_v62 = vld [vmem:[%s4291_s6 + $0xf8] sm:$0xff]  ;;  %v332_v63 = vld [vmem:[%s4291_s6 + $0xf0] sm:$0xff] }
 0x171   : > { %v5287_v54 = vsub.f32 %v1149_v1, %v2100_v31  ;;  %v2369_v40 = vand.u32 4294901760, %v2368_v48  ;;  %v1408_v5 = vsub.f32 %v5270_v20, %v1407_v59 }
 0x172   : > { %v5289_v8 = vsub.f32 %v1146_v46, %v2097_v60  ;;  %v5291_v32 = vpack.c.bf16 %v2100_v31, %v2097_v60  ;;  %v1401_v27 = vsub.f32 %v5272_v9, %v1400_v42  ;;  %v557_v30 = vpop.permute.xlu1 %556  ;;  %v2376_v35 = vand.u32 4294901760, %v2375_v25 }
 0x173   : > { %v555_v16 = vpop.permute.xlu0 %554  ;;  %v2262_v43 = vand.u32 4294901760, %v5287_v54  ;;  %v1409_v60 = vand.u32 4294901760, %v1408_v5  ;;  %v5314_v5 = vpack.c.bf16 %v1407_v59, %v1400_v42 }
 0x174   : > { %5957 = vst [vmem:[#allocation113_spill] sm:$0xff] %v5291_v32  ;;  %v2255_v1 = vand.u32 4294901760, %v5289_v8  ;;  %3663 = vmatpush3.bf16.xpose.msra.mxu1 %v5291_v32  ;;  %v5300_v46 = vpack.c.bf16 %v2376_v35, %v2369_v40  ;;  %v1402_v31 = vand.u32 4294901760, %v1401_v27  ;;  %v5312_v27 = vpack.c.bf16 %v2374_v36, %v2367_v2 }
 0x175   : > { %v2263_v25 = vsub.f32 %v5287_v54, %v2262_v43  ;;  %v845_v2 = vsel %vm814_vm0, %v4805_v18, %v491_v47 }
 0x176   : > { %5958 = vst [vmem:[#allocation114_spill] sm:$0xff] %v5300_v46  ;;  %v2256_v48 = vsub.f32 %v5289_v8, %v2255_v1  ;;  %v461_v7 = vpop.permute.xlu1 %460  ;;  %v5310_v35 = vpack.c.bf16 %v1409_v60, %v1402_v31  ;;  %v5316_v40 = vpack.c.bf16 %v2262_v43, %v2255_v1  ;;  %v846_v31 = vsel %vm814_vm0, %v4802_v22, %v493_v56 }
 0x177   : > { %v459_v32 = vpop.permute.xlu0 %458  ;;  %v2264_v9 = vand.u32 4294901760, %v2263_v25  ;;  %v877_v22 = vsel %vm814_vm0, %v4819_v33, %v555_v16  ;;  %v316_v33 = vld [vmem:[%s4291_s6 + $0x70] sm:$0xff] }
 0x178   : > { %v2257_v13 = vand.u32 4294901760, %v2256_v48  ;;  %v878_v48 = vsel %vm814_vm0, %v4816_v51, %v557_v30  ;;  %v317_v30 = vld [vmem:[%s4291_s6 + $0x78] sm:$0xff] }
 0x17a   : > { %v5318_v20 = vpack.c.bf16 %v2264_v9, %v2257_v13  ;;  %v525_v46 = vpop.permute.xlu1 %524  ;;  %v365_v13 = vld [vmem:[%s4291_s6 + $0x1f8] sm:$0xff]  ;;  %v364_v9 = vld [vmem:[%s4291_s6 + $0x1f0] sm:$0xff] }
 0x17b   : > { %v523_v39 = vpop.permute.xlu0 %522 }
 0x17e   : > { %v685_v36 = vpop.permute.xlu1 %684 }
 0x17f   : > { %v683_v59 = vpop.permute.xlu0 %682  ;;  %v911_v43 = vsel %vm879_vm1, %v846_v31, %v685_v36 }
 0x180   : > { %v910_v42 = vsel %vm879_vm1, %v845_v2, %v683_v59  ;;  %v975_v1 = vmul.f32 %v911_v43, %v333_v62 }
 0x181   : > { %v974_v60 = vmul.f32 %v910_v42, %v332_v63  ;;  %v830_v42 = vsel %vm814_vm0, %v4834_v24, %v461_v7  ;;  %v862_v7 = vsel %vm814_vm0, %v4864_v28, %v525_v46 }
 0x182   : > { %v1107_v18 = vsel %vm1009_vm2, %v975_v1, 0  ;;  %v749_v47 = vpop.permute.xlu1 %748  ;;  %v829_v1 = vsel %vm814_vm0, %v4837_v19, %v459_v32  ;;  %v861_v19 = vsel %vm814_vm0, %v4867_v4, %v523_v39  ;;  %v349_v32 = vld [vmem:[%s4291_s6 + $0x178] sm:$0xff] }
 0x183   : > { %v1104_v56 = vsel %vm1009_vm2, %v974_v60, 0  ;;  %v747_v25 = vpop.permute.xlu0 %746  ;;  %v1299_v31 = vand.u32 4294901760, %v1107_v18  ;;  %v943_v62 = vsel %vm879_vm1, %v878_v48, %v749_v47 }
 0x184   : > { %v1296_v2 = vand.u32 4294901760, %v1104_v56  ;;  %v942_v63 = vsel %vm879_vm1, %v877_v22, %v747_v25  ;;  %v1007_v36 = vmul.f32 %v943_v62, %v365_v13 }
 0x185   : > { %v1006_v59 = vmul.f32 %v942_v63, %v364_v9  ;;  %v5338_v43 = vsub.f32 %v1107_v18, %v1299_v31 }
 0x186   : > { %v5340_v51 = vsub.f32 %v1104_v56, %v1296_v2  ;;  %v5344_v16 = vpack.c.bf16 %v1299_v31, %v1296_v2  ;;  %v1203_v60 = vsel %vm1009_vm2, %v1007_v36, 0  ;;  %v653_v9 = vpop.permute.xlu1 %652  ;;  %v348_v31 = vld [vmem:[%s4291_s6 + $0x170] sm:$0xff] }
 0x187   : > { %v1200_v13 = vsel %vm1009_vm2, %v1006_v59, 0  ;;  %v651_v48 = vpop.permute.xlu0 %650  ;;  %v2154_v22 = vand.u32 4294901760, %v1203_v60  ;;  %v895_v56 = vsel %vm879_vm1, %v830_v42, %v653_v9 }
 0x188   : > { %v2151_v18 = vand.u32 4294901760, %v1200_v13  ;;  %v894_v47 = vsel %vm879_vm1, %v829_v1, %v651_v48  ;;  %3473 = vmatprep.subr.bf16.mxu0 %v5344_v16  ;;  %v959_v25 = vmul.f32 %v895_v56, %v317_v30  ;;  %v3536_v62 = vpack.c.bf16 %v5338_v43, %v5340_v51 }
 0x189   : > { %v958_v24 = vmul.f32 %v894_v47, %v316_v33  ;;  %v5365_v63 = vsub.f32 %v1203_v60, %v2154_v22  ;;  %v1526_v56 = vand.u32 4294901760, %v5340_v51  ;;  %v1533_v47 = vand.u32 4294901760, %v5338_v43 }
 0x18a   : > { %v5361_v2 = vpack.c.bf16 %v2154_v22, %v2151_v18  ;;  %v5367_v36 = vsub.f32 %v1200_v13, %v2151_v18  ;;  %v1059_v59 = vsel %vm1009_vm2, %v959_v25, 0  ;;  %v717_v33 = vpop.permute.xlu1 %716 }
 0x18b   : > { %v1056_v30 = vsel %vm1009_vm2, %v958_v24, 0  ;;  %v715_v28 = vpop.permute.xlu0 %714  ;;  %v1251_v46 = vand.u32 4294901760, %v1059_v59  ;;  %v927_v4 = vsel %vm879_vm1, %v862_v7, %v717_v33 }
 0x18c   : > { %v1248_v42 = vand.u32 4294901760, %v1056_v30  ;;  %v926_v39 = vsel %vm879_vm1, %v861_v19, %v715_v28  ;;  %3665 = vmatprep.subr.bf16.mxu1 %v5361_v2  ;;  %v991_v1 = vmul.f32 %v927_v4, %v349_v32  ;;  %v2381_v7 = vand.u32 4294901760, %v5367_v36 }
 0x18d   : > { %v990_v9 = vmul.f32 %v926_v39, %v348_v31  ;;  %v5374_v60 = vsub.f32 %v1059_v59, %v1251_v46  ;;  %v2388_v19 = vand.u32 4294901760, %v5365_v63  ;;  %v3728_v59 = vpack.c.bf16 %v5365_v63, %v5367_v36 }
 0x18e   : > { %v5376_v13 = vsub.f32 %v1056_v30, %v1248_v42  ;;  %v5378_v48 = vpack.c.bf16 %v1251_v46, %v1248_v42  ;;  %v1155_v22 = vsel %vm1009_vm2, %v991_v1, 0  ;;  %v5400_v42 = vpack.c.bf16 %v1533_v47, %v1526_v56 }
 0x18f   : > { %v1152_v18 = vsel %vm1009_vm2, %v990_v9, 0  ;;  %v2106_v25 = vand.u32 4294901760, %v1155_v22  ;;  %v1421_v32 = vand.u32 4294901760, %v5374_v60  ;;  %v5408_v1 = vpack.c.bf16 %v2388_v19, %v2381_v7 }
 0x190   : > { %v2103_v24 = vand.u32 4294901760, %v1152_v18  ;;  %3475 = vmatpush3.bf16.xpose.msra.mxu0 %v5378_v48  ;;  %v1414_v31 = vand.u32 4294901760, %v5376_v13  ;;  %v3538_v30 = vpack.c.bf16 %v5374_v60, %v5376_v13 }
 0x191   : > { %3477 = vmatprep.subr.bf16.mxu0 %v4402_v38  ;;  %v5394_v33 = vsub.f32 %v1155_v22, %v2106_v25 }
 0x192   : > { %v5396_v28 = vsub.f32 %v1152_v18, %v2103_v24  ;;  %v5398_v46 = vpack.c.bf16 %v2106_v25, %v2103_v24  ;;  %v5410_v9 = vpack.c.bf16 %v1421_v32, %v1414_v31  ;;  %v5964_v18 = vld [vmem:[#allocation8_spill] sm:$0xff]  ;;  %v5967_v25 = vld [vmem:[#allocation11_spill] sm:$0xff] }
 0x193   : > { %v2276_v4 = vand.u32 4294901760, %v5394_v33  ;;  %v5968_v24 = vld [vmem:[#allocation12_spill] sm:$0xff] }
 0x194   : > { %v2269_v39 = vand.u32 4294901760, %v5396_v28  ;;  %3667 = vmatpush3.bf16.xpose.msra.mxu1 %v5398_v46  ;;  %v3730_v38 = vpack.c.bf16 %v5394_v33, %v5396_v28 }
 0x195   : > { %3669 = vmatprep.subr.bf16.mxu1 %v4443_v37  ;;  %v1527_v37 = vsub.f32 %v5340_v51, %v1526_v56  ;;  %v5965_v56 = vld [vmem:[#allocation9_spill] sm:$0xff]  ;;  %v6048_v51 = vld [vmem:[#allocation23_spill] sm:$0xff] }
 0x196   : > { %v5412_v22 = vpack.c.bf16 %v2276_v4, %v2269_v39 }
 0x197   : > { %3069 = vmatmul.mubr.f32.vlgmr.msra.gmra.mrb[0].mxu0 %v4991_v61 }
 0x198   : > { %3479 = vmatpush3.bf16.xpose.msra.mxu0 %v4445_v44  ;;  %3102 = vmatprep.mubr.f32.mxu0 %v4941_v10  ;;  %v1534_v44 = vsub.f32 %v5338_v43, %v1533_v47  ;;  %v5966_v47 = vpack.c.bf16 %v5964_v18, %v5965_v56  ;;  %v6001_v18 = vld [vmem:[#allocation56_spill] sm:$0xff]  ;;  %v6002_v56 = vld [vmem:[#allocation57_spill] sm:$0xff]  ;;  %v6045_v43 = vld [vmem:[#allocation10_spill] sm:$0xff] }
 0x199   : > { %3481 = vmatprep.subr.bf16.mxu0 %v4574_v41 }
 0x19a   : > { %v1535_v41 = vand.u32 4294901760, %v1534_v44  ;;  %v5977_v44 = vld [vmem:[#allocation24_spill] sm:$0xff] }
 0x19b   : > { %3273 = vmatmul.mubr.f32.vlgmr.msra.gmra.mrb[0].mxu1 %v4991_v61 }
 0x19c   : > { %3671 = vmatpush3.bf16.xpose.msra.mxu1 %v4463_v49  ;;  %3306 = vmatprep.mubr.f32.mxu1 %v4941_v10  ;;  %v1528_v49 = vand.u32 4294901760, %v1527_v37 }
 0x19d   : > { %3673 = vmatprep.subr.bf16.mxu1 %v4615_v3  ;;  %v2389_v3 = vsub.f32 %v5365_v63, %v2388_v19  ;;  %v5971_v19 = vld [vmem:[#allocation21_spill] sm:$0xff]  ;;  %v6050_v63 = vld [vmem:[#allocation26_spill] sm:$0xff] }
 0x19f   : > { %v2390_v61 = vand.u32 4294901760, %v2389_v3  ;;  %v5981_v3 = vld [vmem:[#allocation28_spill] sm:$0xff] }
 0x1a0   : > { %3483 = vmatpush3.bf16.xpose.msra.mxu0 %v4617_v58  ;;  %v2382_v58 = vsub.f32 %v5367_v36, %v2381_v7  ;;  %v5970_v7 = vld [vmem:[#allocation65_spill] sm:$0xff] }
 0x1a1   : > { %3485 = vmatprep.subr.bf16.mxu0 %v4746_v14  ;;  %v5960_v14 = vld [vmem:[#allocation114_spill] sm:$0xff]  ;;  %v6051_v36 = vld [vmem:[#allocation29_spill] sm:$0xff] }
 0x1a4   : > { %3675 = vmatpush3.bf16.xpose.msra.mxu1 %v4635_v57  ;;  %v5959_v57 = vld [vmem:[#allocation103_spill] sm:$0xff] }
 0x1a5   : > { %3677 = vmatprep.subr.bf16.mxu1 %v4787_v34  ;;  %v1422_v34 = vsub.f32 %v5374_v60, %v1421_v32  ;;  %v5972_v32 = vld [vmem:[#allocation22_spill] sm:$0xff]  ;;  %v6052_v60 = vld [vmem:[#allocation39_spill] sm:$0xff] }
 0x1a8   : > { %3487 = vmatpush3.bf16.xpose.msra.mxu0 %v4789_v15  ;;  %v1415_v15 = vsub.f32 %v5376_v13, %v1414_v31  ;;  %v5973_v31 = vpack.c.bf16 %v5971_v19, %v5972_v32  ;;  %v6007_v19 = vld [vmem:[#allocation71_spill] sm:$0xff]  ;;  %v6008_v32 = vld [vmem:[#allocation72_spill] sm:$0xff] }
 0x1a9   : > { %3489 = vmatprep.subr.bf16.mxu0 %v4920_v53  ;;  %v2383_v53 = vand.u32 4294901760, %v2382_v58  ;;  %v5980_v58 = vld [vmem:[#allocation27_spill] sm:$0xff]  ;;  %v6053_v13 = vld [vmem:[#allocation32_spill] sm:$0xff] }
 0x1ac   : > { %3679 = vmatpush3.bf16.xpose.msra.mxu1 %v4807_v50  ;;  %v3504_v50 = vpack.c.bf16 %v1535_v41, %v1528_v49  ;;  %v5978_v49 = vld [vmem:[#allocation25_spill] sm:$0xff] }
 0x1ad   : > { %3681 = vmatprep.subr.bf16.mxu1 %v4965_v23  ;;  %v1416_v23 = vand.u32 4294901760, %v1415_v15  ;;  %v5979_v41 = vpack.c.bf16 %v5977_v44, %v5978_v49  ;;  %v5984_v15 = vld [vmem:[#allocation38_spill] sm:$0xff]  ;;  %v6014_v49 = vld [vmem:[#allocation75_spill] sm:$0xff] }
 0x1ae   : > { %v6013_v44 = vld [vmem:[#allocation74_spill] sm:$0xff] }
 0x1b0   : > { %3491 = vmatpush3.bf16.xpose.msra.mxu0 %v4967_v17  ;;  %v1423_v17 = vand.u32 4294901760, %v1422_v34 }
 0x1b1   : > { %3493 = vmatprep.subr.bf16.mxu0 %v5063_v29  ;;  %v3696_v29 = vpack.c.bf16 %v2390_v61, %v2383_v53  ;;  %v5987_v53 = vld [vmem:[#allocation31_spill] sm:$0xff] }
 0x1b4   : > { %3683 = vmatpush3.bf16.xpose.msra.mxu1 %v4985_v6  ;;  %v2270_v6 = vsub.f32 %v5396_v28, %v2269_v39  ;;  %v5975_v39 = vld [vmem:[#allocation15_spill] sm:$0xff]  ;;  %v6057_v28 = vld [vmem:[#allocation48_spill] sm:$0xff] }
 0x1b5   : > { %3685 = vmatprep.subr.bf16.mxu1 %v5084_v0  ;;  %v3506_v0 = vpack.c.bf16 %v1423_v17, %v1416_v23  ;;  %v5989_v23 = vld [vmem:[#allocation40_spill] sm:$0xff]  ;;  %v5990_v17 = vld [vmem:[#allocation41_spill] sm:$0xff] }
 0x1b8   : > { %3495 = vmatpush3.bf16.xpose.msra.mxu0 %v5094_v52  ;;  %v2271_v52 = vand.u32 4294901760, %v2270_v6  ;;  %v5991_v6 = vpack.c.bf16 %v5989_v23, %v5990_v17  ;;  %v6025_v23 = vld [vmem:[#allocation90_spill] sm:$0xff]  ;;  %v6026_v17 = vld [vmem:[#allocation91_spill] sm:$0xff] }
 0x1b9   : > { %3497 = vmatprep.subr.bf16.mxu0 %v5171_v55 }
 0x1bc   : > { %3687 = vmatpush3.bf16.xpose.msra.mxu1 %v5102_v45  ;;  %v2277_v45 = vsub.f32 %v5394_v33, %v2276_v4  ;;  %v5974_v4 = vld [vmem:[#allocation14_spill] sm:$0xff]  ;;  %v6056_v33 = vld [vmem:[#allocation55_spill] sm:$0xff] }
 0x1bd   : > { %3689 = vmatprep.subr.bf16.mxu1 %v5192_v26  ;;  %v5961_v26 = vld [vmem:[#allocation5_spill] sm:$0xff]  ;;  %v5976_v37 = vpack.c.bf16 %v5974_v4, %v5975_v39  ;;  %v6010_v4 = vld [vmem:[#allocation62_spill] sm:$0xff]  ;;  %v6011_v39 = vld [vmem:[#allocation63_spill] sm:$0xff] }
 0x1be   : > { %v2278_v55 = vand.u32 4294901760, %v2277_v45  ;;  %v5992_v45 = vld [vmem:[#allocation43_spill] sm:$0xff] }
 0x1c0   : > { %3499 = vmatpush3.bf16.xpose.msra.mxu0 %v5202_v12  ;;  %v5962_v12 = vld [vmem:[#allocation6_spill] sm:$0xff] }
 0x1c1   : > { %3501 = vmatprep.subr.bf16.mxu0 %v5279_v11  ;;  %v5963_v11 = vpack.c.bf16 %v5961_v26, %v5962_v12  ;;  %v5998_v12 = vld [vmem:[#allocation46_spill] sm:$0xff] }
 0x1c4   : > { %3691 = vmatpush3.bf16.xpose.msra.mxu1 %v5959_v57  ;;  %v5982_v57 = vpack.c.bf16 %v5980_v58, %v5981_v3  ;;  %v6016_v58 = vld [vmem:[#allocation77_spill] sm:$0xff]  ;;  %v6017_v3 = vld [vmem:[#allocation78_spill] sm:$0xff] }
 0x1c5   : > { %3693 = vmatprep.subr.bf16.mxu1 %v5960_v14  ;;  %v5983_v14 = vld [vmem:[#allocation37_spill] sm:$0xff] }
 0x1c6   : > { %v5985_v34 = vpack.c.bf16 %v5983_v14, %v5984_v15  ;;  %v6019_v14 = vld [vmem:[#allocation87_spill] sm:$0xff]  ;;  %v6020_v15 = vld [vmem:[#allocation88_spill] sm:$0xff] }
 0x1c8   : > { %3503 = vmatpush3.bf16.xpose.msra.mxu0 %v5310_v35  ;;  %v3698_v35 = vpack.c.bf16 %v2278_v55, %v2271_v52  ;;  %v5995_v52 = vld [vmem:[#allocation53_spill] sm:$0xff]  ;;  %v5996_v55 = vld [vmem:[#allocation54_spill] sm:$0xff] }
 0x1c9   : > { %3505 = vmatprep.subr.bf16.mxu0 %v3504_v50  ;;  %v5986_v50 = vld [vmem:[#allocation30_spill] sm:$0xff]  ;;  %v5997_v26 = vpack.c.bf16 %v5995_v52, %v5996_v55  ;;  %v6031_v52 = vld [vmem:[#allocation104_spill] sm:$0xff]  ;;  %v6032_v55 = vld [vmem:[#allocation105_spill] sm:$0xff] }
 0x1ca   : > { %v5988_v61 = vpack.c.bf16 %v5986_v50, %v5987_v53  ;;  %v6022_v50 = vld [vmem:[#allocation80_spill] sm:$0xff]  ;;  %v6023_v53 = vld [vmem:[#allocation81_spill] sm:$0xff] }
 0x1cc   : > { %3695 = vmatpush3.bf16.xpose.msra.mxu1 %v5318_v20  ;;  %v5969_v20 = vpack.c.bf16 %v5967_v25, %v5968_v24  ;;  %v6004_v25 = vld [vmem:[#allocation59_spill] sm:$0xff]  ;;  %v6005_v24 = vld [vmem:[#allocation60_spill] sm:$0xff] }
 0x1cd   : > { %3697 = vmatprep.subr.bf16.mxu1 %v3696_v29  ;;  %v5993_v29 = vld [vmem:[#allocation44_spill] sm:$0xff] }
 0x1d0   : > { %3507 = vmatpush3.bf16.xpose.msra.mxu0 %v3506_v0  ;;  %v5994_v0 = vpack.c.bf16 %v5992_v45, %v5993_v29  ;;  %v6028_v45 = vld [vmem:[#allocation93_spill] sm:$0xff]  ;;  %v6029_v29 = vld [vmem:[#allocation94_spill] sm:$0xff] }
 0x1d1   : > { %3509 = vmatprep.subr.bf16.mxu0 %v5963_v11  ;;  %v5999_v11 = vld [vmem:[#allocation47_spill] sm:$0xff] }
 0x1d4   : > { %3699 = vmatpush3.bf16.xpose.msra.mxu1 %v3698_v35  ;;  %v6000_v35 = vpack.c.bf16 %v5998_v12, %v5999_v11  ;;  %v6034_v12 = vld [vmem:[#allocation96_spill] sm:$0xff]  ;;  %v6035_v11 = vld [vmem:[#allocation97_spill] sm:$0xff] }
 0x1d5   : > { %3701 = vmatprep.subr.bf16.mxu1 %v5966_v47  ;;  %v6003_v47 = vpack.c.bf16 %v6001_v18, %v6002_v56  ;;  %v6037_v18 = vld [vmem:[#allocation107_spill] sm:$0xff]  ;;  %v6038_v56 = vld [vmem:[#allocation108_spill] sm:$0xff] }
 0x1d7   : > { %3103 = vmatmul.mubr.f32.vlgmr.msra.gmra.mrb[0].mxu0 %v4941_v10 }
 0x1d8   : > { %3511 = vmatpush3.bf16.xpose.msra.mxu0 %v5969_v20  ;;  %3136 = vmatprep.mubr.f32.mxu0 %v5970_v7  ;;  %v6006_v20 = vpack.c.bf16 %v6004_v25, %v6005_v24  ;;  %v6040_v25 = vld [vmem:[#allocation110_spill] sm:$0xff]  ;;  %v6041_v24 = vld [vmem:[#allocation111_spill] sm:$0xff] }
 0x1d9   : > { %3513 = vmatprep.subr.bf16.mxu0 %v5973_v31  ;;  %v6009_v31 = vpack.c.bf16 %v6007_v19, %v6008_v32  ;;  %v6043_v19 = vpack.c.bf16 %v5287_v54, %v5289_v8  ;;  %v6044_v32 = vld [vmem:[#allocation7_spill] sm:$0xff]  ;;  %v6046_v54 = vld [vmem:[#allocation13_spill] sm:$0xff]  ;;  %v6047_v8 = vld [vmem:[#allocation66_spill] sm:$0xff] }
 0x1db   : > { %3307 = vmatmul.mubr.f32.vlgmr.msra.gmra.mrb[0].mxu1 %v4941_v10 }
 0x1dc   : > { %3703 = vmatpush3.bf16.xpose.msra.mxu1 %v5976_v37  ;;  %3340 = vmatprep.mubr.f32.mxu1 %v5970_v7  ;;  %v6012_v37 = vpack.c.bf16 %v6010_v4, %v6011_v39  ;;  %v6061_v4 = vld [vmem:[#allocation64_spill] sm:$0xff] }
 0x1dd   : > { %3705 = vmatprep.subr.bf16.mxu1 %v5979_v41  ;;  %v6015_v41 = vpack.c.bf16 %v6013_v44, %v6014_v49  ;;  %v6062_v39 = vld [vmem:[#allocation76_spill] sm:$0xff]  ;;  %v6064_v44 = vld [vmem:[#allocation89_spill] sm:$0xff]  ;;  %v6065_v49 = vld [vmem:[#allocation82_spill] sm:$0xff] }
 0x1e0   : > { %3515 = vmatpush3.bf16.xpose.msra.mxu0 %v5982_v57  ;;  %v6018_v57 = vpack.c.bf16 %v6016_v58, %v6017_v3  ;;  %v6067_v58 = vld [vmem:[#allocation95_spill] sm:$0xff]  ;;  %v6068_v3 = vld [vmem:[#allocation106_spill] sm:$0xff] }
 0x1e1   : > { %3517 = vmatprep.subr.bf16.mxu0 %v5985_v34  ;;  %v6021_v34 = vpack.c.bf16 %v6019_v14, %v6020_v15  ;;  %v6070_v14 = vld [vmem:[#allocation109_spill] sm:$0xff]  ;;  %v6071_v15 = vld [vmem:[#allocation112_spill] sm:$0xff] }
 0x1e4   : > { %3707 = vmatpush3.bf16.xpose.msra.mxu1 %v5988_v61  ;;  %v6024_v61 = vpack.c.bf16 %v6022_v50, %v6023_v53  ;;  %v6073_v50 = vld [vmem:[#allocation17_spill] sm:$0xff]  ;;  %v6074_v53 = vld [vmem:[#allocation18_spill] sm:$0xff] }
 0x1e5   : > { %3709 = vmatprep.subr.bf16.mxu1 %v5991_v6  ;;  %v6027_v6 = vpack.c.bf16 %v6025_v23, %v6026_v17  ;;  %v6076_v23 = vld [vmem:[#allocation33_spill] sm:$0xff]  ;;  %v6077_v17 = vld [vmem:[#allocation20_spill] sm:$0xff] }
 0x1e8   : > { %3519 = vmatpush3.bf16.xpose.msra.mxu0 %v5994_v0  ;;  %v6030_v0 = vpack.c.bf16 %v6028_v45, %v6029_v29  ;;  %v6079_v45 = vld [vmem:[#allocation35_spill] sm:$0xff]  ;;  %v6080_v29 = vld [vmem:[#allocation49_spill] sm:$0xff] }
 0x1e9   : > { %3521 = vmatprep.subr.bf16.mxu0 %v5997_v26  ;;  %v6033_v26 = vpack.c.bf16 %v6031_v52, %v6032_v55  ;;  %v6082_v52 = vld [vmem:[#allocation50_spill] sm:$0xff]  ;;  %v6083_v55 = vld [vmem:[#allocation51_spill] sm:$0xff] }
 0x1ec   : > { %3711 = vmatpush3.bf16.xpose.msra.mxu1 %v6000_v35  ;;  %v6036_v35 = vpack.c.bf16 %v6034_v12, %v6035_v11  ;;  %v6085_v12 = vld [vmem:[#allocation52_spill] sm:$0xff] }
 0x1ed   : > { %3713 = vmatprep.subr.bf16.mxu1 %v6003_v47  ;;  %v6039_v47 = vpack.c.bf16 %v6037_v18, %v6038_v56  ;;  %v6086_v11 = vld [vmem:[#allocation68_spill] sm:$0xff]  ;;  %v6088_v18 = vld [vmem:[#allocation83_spill] sm:$0xff]  ;;  %v6089_v56 = vld [vmem:[#allocation70_spill] sm:$0xff] }
 0x1f0   : > { %3523 = vmatpush3.bf16.xpose.msra.mxu0 %v6006_v20  ;;  %v6042_v20 = vpack.c.bf16 %v6040_v25, %v6041_v24  ;;  %v6091_v25 = vld [vmem:[#allocation85_spill] sm:$0xff]  ;;  %v6092_v24 = vld [vmem:[#allocation99_spill] sm:$0xff] }
 0x1f1   : > { %3525 = vmatprep.subr.bf16.mxu0 %v6009_v31  ;;  %v6060_v31 = vld [vmem:[#allocation73_spill] sm:$0xff] }
 0x1f4   : > { %3715 = vmatpush3.bf16.xpose.msra.mxu1 %v6012_v37  ;;  %v6063_v37 = vld [vmem:[#allocation79_spill] sm:$0xff] }
 0x1f5   : > { %3717 = vmatprep.subr.bf16.mxu1 %v6015_v41  ;;  %v6066_v41 = vld [vmem:[#allocation92_spill] sm:$0xff] }
 0x1f8   : > { %3527 = vmatpush3.bf16.xpose.msra.mxu0 %v6018_v57  ;;  %v6069_v57 = vld [vmem:[#allocation98_spill] sm:$0xff] }
 0x1f9   : > { %3529 = vmatprep.subr.bf16.mxu0 %v6021_v34  ;;  %v6072_v34 = vld [vmem:[#allocation113_spill] sm:$0xff] }
 0x1fc   : > { %3719 = vmatpush3.bf16.xpose.msra.mxu1 %v6024_v61  ;;  %v6075_v61 = vld [vmem:[#allocation19_spill] sm:$0xff] }
 0x1fd   : > { %3721 = vmatprep.subr.bf16.mxu1 %v6027_v6  ;;  %v6078_v6 = vld [vmem:[#allocation34_spill] sm:$0xff] }
 0x200   : > { %3531 = vmatpush3.bf16.xpose.msra.mxu0 %v6030_v0  ;;  %v6081_v0 = vld [vmem:[#allocation36_spill] sm:$0xff] }
 0x201   : > { %3533 = vmatprep.subr.bf16.mxu0 %v6033_v26  ;;  %v6084_v26 = vld [vmem:[#allocation67_spill] sm:$0xff] }
 0x204   : > { %3723 = vmatpush3.bf16.xpose.msra.mxu1 %v6036_v35  ;;  %v6087_v35 = vld [vmem:[#allocation69_spill] sm:$0xff] }
 0x205   : > { %3725 = vmatprep.subr.bf16.mxu1 %v6039_v47  ;;  %v6090_v47 = vld [vmem:[#allocation84_spill] sm:$0xff] }
 0x208   : > { %3535 = vmatpush3.bf16.xpose.msra.mxu0 %v6042_v20  ;;  %v6093_v20 = vld [vmem:[#allocation86_spill] sm:$0xff] }
 0x209   : > { %3537 = vmatprep.subr.bf16.mxu0 %v3536_v62  ;;  %v6049_v62 = vld [vmem:[#allocation16_spill] sm:$0xff] }
 0x20c   : > { %3727 = vmatpush3.bf16.xpose.msra.mxu1 %v6043_v19  ;;  %v6094_v19 = vld [vmem:[#allocation100_spill] sm:$0xff] }
 0x20d   : > { %3729 = vmatprep.subr.bf16.mxu1 %v3728_v59  ;;  %v6054_v59 = vld [vmem:[#allocation42_spill] sm:$0xff] }
 0x210   : > { %3539 = vmatpush3.bf16.xpose.msra.mxu0 %v3538_v30  ;;  %v6055_v30 = vld [vmem:[#allocation45_spill] sm:$0xff] }
 0x211   : > { %3541 = vmatprep.subr.bf16.mxu0 %v6044_v32 }
 0x214   : > { %3731 = vmatpush3.bf16.xpose.msra.mxu1 %v3730_v38  ;;  %v6058_v38 = vld [vmem:[#allocation58_spill] sm:$0xff] }
 0x215   : > { %3733 = vmatprep.subr.bf16.mxu1 %v6045_v43 }
 0x217   : > { %3137 = vmatmul.mubr.f32.vlgmr.msra.gmra.mrb[0].mxu0 %v5970_v7 }
 0x218   : > { %3543 = vmatpush3.bf16.xpose.msra.mxu0 %v6046_v54  ;;  %3170 = vmatprep.mubr.f32.mxu0 %v6047_v8 }
 0x219   : > { %3545 = vmatprep.subr.bf16.mxu0 %v6048_v51 }
 0x21b   : > { %3341 = vmatmul.mubr.f32.vlgmr.msra.gmra.mrb[0].mxu1 %v5970_v7  ;;  %v6059_v7 = vld [vmem:[#allocation61_spill] sm:$0xff] }
 0x21c   : > { %3735 = vmatpush3.bf16.xpose.msra.mxu1 %v6049_v62  ;;  %3374 = vmatprep.mubr.f32.mxu1 %v6047_v8 }
 0x21d   : > { %3737 = vmatprep.subr.bf16.mxu1 %v6050_v63 }
 0x220   : > { %3547 = vmatpush3.bf16.xpose.msra.mxu0 %v6051_v36 }
 0x221   : > { %3549 = vmatprep.subr.bf16.mxu0 %v6052_v60 }
 0x224   : > { %3739 = vmatpush3.bf16.xpose.msra.mxu1 %v6053_v13 }
 0x225   : > { %3741 = vmatprep.subr.bf16.mxu1 %v6054_v59 }
 0x228   : > { %3551 = vmatpush3.bf16.xpose.msra.mxu0 %v6055_v30 }
 0x229   : > { %3553 = vmatprep.subr.bf16.mxu0 %v6056_v33 }
 0x22c   : > { %3743 = vmatpush3.bf16.xpose.msra.mxu1 %v6057_v28 }
 0x22d   : > { %3745 = vmatprep.subr.bf16.mxu1 %v6058_v38 }
 0x230   : > { %3555 = vmatpush3.bf16.xpose.msra.mxu0 %v6059_v7 }
 0x231   : > { %3557 = vmatprep.subr.bf16.mxu0 %v6060_v31 }
 0x234   : > { %3747 = vmatpush3.bf16.xpose.msra.mxu1 %v6061_v4 }
 0x235   : > { %3749 = vmatprep.subr.bf16.mxu1 %v6062_v39 }
 0x238   : > { %3559 = vmatpush3.bf16.xpose.msra.mxu0 %v6063_v37 }
 0x239   : > { %3561 = vmatprep.subr.bf16.mxu0 %v6064_v44 }
 0x23c   : > { %3751 = vmatpush3.bf16.xpose.msra.mxu1 %v6065_v49 }
 0x23d   : > { %3753 = vmatprep.subr.bf16.mxu1 %v6066_v41 }
 0x240   : > { %3563 = vmatpush3.bf16.xpose.msra.mxu0 %v6067_v58 }
 0x241   : > { %3565 = vmatprep.subr.bf16.mxu0 %v6068_v3 }
 0x244   : > { %3755 = vmatpush3.bf16.xpose.msra.mxu1 %v6069_v57 }
 0x245   : > { %3757 = vmatprep.subr.bf16.mxu1 %v6070_v14 }
 0x248   : > { %3567 = vmatpush3.bf16.xpose.msra.mxu0 %v6071_v15 }
 0x249   : > { %3569 = vmatprep.subr.bf16.mxu0 %v5344_v16 }
 0x24c   : > { %3759 = vmatpush3.bf16.xpose.msra.mxu1 %v6072_v34 }
 0x24d   : > { %3761 = vmatprep.subr.bf16.mxu1 %v5361_v2 }
 0x250   : > { %3571 = vmatpush3.bf16.xpose.msra.mxu0 %v5378_v48 }
 0x251   : > { %3573 = vmatprep.subr.bf16.mxu0 %v6073_v50  ;;  %v6096_v50 = vld [vmem:[#allocation102_spill] sm:$0xff] }
 0x254   : > { %3763 = vmatpush3.bf16.xpose.msra.mxu1 %v5398_v46 }
 0x255   : > { %3765 = vmatprep.subr.bf16.mxu1 %v6074_v53 }
 0x257   : > { %3171 = vmatmul.mubr.f32.vlgmr.msra.gmra.mrb[0].mxu0 %v6047_v8 }
 0x258   : > { %3575 = vmatpush3.bf16.xpose.msra.mxu0 %v6075_v61  ;;  %3204 = vmatprep.mubr.f32.mxu0 %v4941_v10 }
 0x259   : > { %3577 = vmatprep.subr.bf16.mxu0 %v6076_v23 }
 0x25b   : > { %3375 = vmatmul.mubr.f32.vlgmr.msra.gmra.mrb[0].mxu1 %v6047_v8  ;;  %v6095_v8 = vld [vmem:[#allocation101_spill] sm:$0xff] }
 0x25c   : > { %3767 = vmatpush3.bf16.xpose.msra.mxu1 %v6077_v17  ;;  %3408 = vmatprep.mubr.f32.mxu1 %v4941_v10 }
 0x25d   : > { %3769 = vmatprep.subr.bf16.mxu1 %v6078_v6 }
 0x260   : > { %3579 = vmatpush3.bf16.xpose.msra.mxu0 %v6079_v45 }
 0x261   : > { %3581 = vmatprep.subr.bf16.mxu0 %v6080_v29 }
 0x264   : > { %3771 = vmatpush3.bf16.xpose.msra.mxu1 %v6081_v0 }
 0x265   : > { %3773 = vmatprep.subr.bf16.mxu1 %v6082_v52 }
 0x268   : > { %3583 = vmatpush3.bf16.xpose.msra.mxu0 %v6083_v55 }
 0x269   : > { %3585 = vmatprep.subr.bf16.mxu0 %v6084_v26 }
 0x26c   : > { %3775 = vmatpush3.bf16.xpose.msra.mxu1 %v6085_v12 }
 0x26d   : > { %3777 = vmatprep.subr.bf16.mxu1 %v6086_v11 }
 0x270   : > { %3587 = vmatpush3.bf16.xpose.msra.mxu0 %v6087_v35 }
 0x271   : > { %3589 = vmatprep.subr.bf16.mxu0 %v6088_v18 }
 0x274   : > { %3779 = vmatpush3.bf16.xpose.msra.mxu1 %v6089_v56 }
 0x275   : > { %3781 = vmatprep.subr.bf16.mxu1 %v6090_v47 }
 0x278   : > { %3591 = vmatpush3.bf16.xpose.msra.mxu0 %v6091_v25 }
 0x279   : > { %3593 = vmatprep.subr.bf16.mxu0 %v6092_v24 }
 0x27c   : > { %3783 = vmatpush3.bf16.xpose.msra.mxu1 %v6093_v20 }
 0x27d   : > { %3785 = vmatprep.subr.bf16.mxu1 %v6094_v19 }
 0x280   : > { %3595 = vmatpush3.bf16.xpose.msra.mxu0 %v6095_v8 }
 0x281   : > { %3597 = vmatprep.subr.bf16.mxu0 %v5308_v21 }
 0x284   : > { %3787 = vmatpush3.bf16.xpose.msra.mxu1 %v6096_v50 }
 0x285   : > { %3789 = vmatprep.subr.bf16.mxu1 %v5312_v27 }
 0x288   : > { %3599 = vmatpush3.bf16.xpose.msra.mxu0 %v5314_v5 }
 0x289   : > { %3601 = vmatprep.subr.bf16.mxu0 %v5400_v42 }
 0x28c   : > { %3791 = vmatpush3.bf16.xpose.msra.mxu1 %v5316_v40 }
 0x28d   : > { %3793 = vmatprep.subr.bf16.mxu1 %v5408_v1 }
 0x290   : > { %3603 = vmatpush3.bf16.xpose.msra.mxu0 %v5410_v9 }
 0x291   : > { %3605 = vmatprep.subr.bf16.mxu0 %v6044_v32 }
 0x294   : > { %3795 = vmatpush3.bf16.xpose.msra.mxu1 %v5412_v22 }
 0x295   : > { %3797 = vmatprep.subr.bf16.mxu1 %v6045_v43 }
 0x297   : > { %3205 = vmatmul.mubr.f32.vlgmr.msra.gmra.mrb[0].mxu0 %v4941_v10 }
 0x298   : > { %3607 = vmatpush3.bf16.xpose.msra.mxu0 %v6046_v54  ;;  %3238 = vmatprep.mubr.f32.mxu0 %v4941_v10 }
 0x299   : > { %3609 = vmatprep.subr.bf16.mxu0 %v6048_v51 }
 0x29b   : > { %3409 = vmatmul.mubr.f32.vlgmr.msra.gmra.mrb[0].mxu1 %v4941_v10 }
 0x29c   : > { %3799 = vmatpush3.bf16.xpose.msra.mxu1 %v6049_v62  ;;  %3442 = vmatprep.mubr.f32.mxu1 %v4941_v10 }
 0x29d   : > { %3801 = vmatprep.subr.bf16.mxu1 %v6050_v63 }
 0x2a0   : > { %3611 = vmatpush3.bf16.xpose.msra.mxu0 %v6051_v36 }
 0x2a1   : > { %3613 = vmatprep.subr.bf16.mxu0 %v6052_v60 }
 0x2a4   : > { %3803 = vmatpush3.bf16.xpose.msra.mxu1 %v6053_v13 }
 0x2a5   : > { %3805 = vmatprep.subr.bf16.mxu1 %v6054_v59 }
 0x2a8   : > { %3615 = vmatpush3.bf16.xpose.msra.mxu0 %v6055_v30 }
 0x2a9   : > { %3617 = vmatprep.subr.bf16.mxu0 %v6056_v33 }
 0x2ac   : > { %3807 = vmatpush3.bf16.xpose.msra.mxu1 %v6057_v28 }
 0x2ad   : > { %3809 = vmatprep.subr.bf16.mxu1 %v6058_v38 }
 0x2b0   : > { %3619 = vmatpush3.bf16.xpose.msra.mxu0 %v6059_v7 }
 0x2b1   : > { %3621 = vmatprep.subr.bf16.mxu0 %v6060_v31 }
 0x2b4   : > { %3811 = vmatpush3.bf16.xpose.msra.mxu1 %v6061_v4 }
 0x2b5   : > { %3813 = vmatprep.subr.bf16.mxu1 %v6062_v39 }
 0x2b8   : > { %3623 = vmatpush3.bf16.xpose.msra.mxu0 %v6063_v37 }
 0x2b9   : > { %3625 = vmatprep.subr.bf16.mxu0 %v6064_v44 }
 0x2bc   : > { %3815 = vmatpush3.bf16.xpose.msra.mxu1 %v6065_v49 }
 0x2bd   : > { %3817 = vmatprep.subr.bf16.mxu1 %v6066_v41 }
 0x2c0   : > { %3627 = vmatpush3.bf16.xpose.msra.mxu0 %v6067_v58 }
 0x2c1   : > { %3629 = vmatprep.subr.bf16.mxu0 %v6068_v3 }
 0x2c4   : > { %3819 = vmatpush3.bf16.xpose.msra.mxu1 %v6069_v57 }
 0x2c5   : > { %3821 = vmatprep.subr.bf16.mxu1 %v6070_v14 }
 0x2c8   : > { %3631 = vmatpush3.bf16.xpose.msra.mxu0 %v6071_v15 }
 0x2c9   : > { %3633 = vmatprep.subr.bf16.mxu0 %v5344_v16 }
 0x2cc   : > { %3823 = vmatpush3.bf16.xpose.msra.mxu1 %v6072_v34 }
 0x2cd   : > { %3825 = vmatprep.subr.bf16.mxu1 %v5361_v2 }
 0x2d0   : > { %3635 = vmatpush3.bf16.xpose.msra.mxu0 %v5378_v48 }
 0x2d4   : > { %3827 = vmatpush3.bf16.xpose.msra.mxu1 %v5398_v46 }
 0x2d7   : > { %3239 = vmatmul.mubr.f32.vlgmr.msra.gmra.mrb[0].mxu0 %v4941_v10 }
 0x2db   : > { %3443 = vmatmul.mubr.f32.vlgmr.msra.gmra.mrb[0].mxu1 %v4941_v10 }
 0x3aa   : > { %v2055_v21 = vpop.f32.mrb[0].mxu0 }
 0x3ab   : > { %v2057_v27 = vpop.f32.mrb[1].mxu0 }
 0x3ac   : > { %v2919_v5 = vcombine.low %v2055_v21, %v2057_v27  ;;  %2932 = sbr.rel (!%p4035_p5) target bundleno = 974 (0x3ce), region = 36 }
 0x3ae   : > { %2923 = vst [vmem:[%s204_s11] sm:$0x77] %v2919_v5  ;;  %v2910_v40 = vpop.f32.mrb[0].mxu1 }
 0x3af   : > { %v2912_v16 = vpop.f32.mrb[1].mxu1 }
 0x3b0   : > { %v2920_v42 = vcombine.low %v2910_v40, %v2912_v16 }
 0x3b2   : > { %2924 = vst [vmem:[%s204_s11 + $0x8] sm:$0x77] %v2920_v42 }
 0x3b3   : > { %s6104_s20 = smov (!%p2935_p11, %s2934_s20), 4 }
 0x3b4   : > { %s5668_s24 = sshll.u32 %s6104_s20, 6 }
 0x3b5   : > { %s2939_s25 = ssub.s32 256, %s5668_s24 }
 0x3b6   : > { %2940 = vsyncadd %s5663_s17, %s2939_s25  ;;  %p3029_p12 = scmp.ne.s32.totalorder %s5668_s24, 0  ;;  %s3035_s26 = sshll.u32 %s4018_s16, 8 }
 0x3b7   : > { %s5677_s28 = scalar_lea.hbm %s5720_s3, %s3035_s26  ;;  %s2946_s29 = sshll.u32 %s204_s11, 4  ;;  %s2947_s29 = int_to_ptr.vmem [resolvable:$true] %s2946_s29 }
 0x3b8   : > { %s3910_s30 = scalar_lea.vmem %s2947_s29, %s5668_s24  ;;  %s3976_s4 = smov [#allocation2]  }
 0x3b9   : > { %p3911_p13 = scmp.ne.s32.totalorder %s2947_s29, %s3910_s30  ;;  %s3914_s5 = sshll.u32 %s3976_s4, 4  ;;  %s3915_s5 = int_to_ptr.vmem [resolvable:$false] %s3914_s5 }
 0x3ba   : > { %s3916_s6 = scalar_lea.vmem %s3915_s5, 512  ;;  %p3917_p2 = scmp.lt.s32.totalorder %s2947_s29, %s3915_s5 }
 0x3bb   : > { %p3912_p0 = pnand %p3911_p13, %p3029_p12  ;;  %p3918_p3 = scmp.lt.s32.totalorder %s3916_s6, %s3910_s30 }
 0x3bd   : > { %p3913_p1 = pneg %p3912_p0  ;;  %p3919_p4 = por %p3918_p3, %p3917_p2 }
 0x3bf   : > { %p3920_p5 = pnand %p3919_p4, %p3913_p1 }
 0x3c1   : > { %3923 = shalt.err (!%p3920_p5)
}
 0x3c2   : > { %s3924_s16 = scalar_lea.hbm %s5677_s28, %s5668_s24  ;;  %s3928_s9 = scalar_lea.hbm %s5720_s3, 576 }
 0x3c3   : > { %p3925_p7 = scmp.ne.s32.totalorder %s5677_s28, %s3924_s16  ;;  %p3929_p10 = scmp.lt.u32.totalorder %s5677_s28, %s5720_s3 }
 0x3c4   : > { %p3930_p11 = scmp.lt.u32.totalorder %s3928_s9, %s3924_s16  ;;  %p3932_p0 = scmp.lt.u32.totalorder %s3924_s16, %s5677_s28 }
 0x3c5   : > { %p3926_p8 = pnand %p3925_p7, %p3029_p12 }
 0x3c6   : > { %p3931_p13 = por %p3930_p11, %p3929_p10 }
 0x3c7   : > { %p3927_p9 = pneg %p3926_p8 }
 0x3c8   : > { %p3933_p1 = por %p3932_p0, %p3931_p13 }
 0x3ca   : > { %p3934_p2 = pnand %p3933_p1, %p3927_p9 }
 0x3cc   : > { %3937 = shalt.err (!%p3934_p2)
}
 0x3cd   : > { %2949 = dma.vmem_to_hbm [thread:$0]  (%p3029_p12), %s2947_s29, %s5668_s24, %s5677_s28, %s5663_s17  }
 0x3ce PF: > { %p3853_p3 = scmp.ge.s32.totalorder %s3972_s15, 2  ;;  %s2958_s19 = sand.u32 1, %s3960_s12  }
 0x3cf   : > { %s2959_s20 = scalar_lea.sflag [#allocation3], %s2958_s19 }
 0x3d0   : > { %p3850_p4 = pnand %p3853_p3, %p4039_p6 }
 0x3d2   : > { %3955 = dma.done.wait (!%p3850_p4), %s2959_s20, 256  }
 0x3d3   : > { %3957 = vsyncadd (!%p3850_p4), %s2959_s20, 4294967040  ;;  %p13_p5 = scmp.ge.s32.totalorder %s4022_s18, 5   ;;  %s6097_s12 = smov %s3964_s13 }
 0x3d4   : > { %s6098_s13 = smov %s3968_s14  ;;  %s6099_s14 = smov %s4033_s21 }
 0x3d5   : > { %s6100_s15 = smov %s4022_s18  ;;  %15 = sbr.rel (!%p13_p5) target bundleno = 3 (0x3), region = 70 }
 0x3dc   :  { %2964 = vsyncpa [#allocation3], 1 }
 0x3dd   :  { %2966 = vsyncpa [#allocation3 + $0x1], 1 }

</bundles_post_ra>
